<compile_context>
chip_gen: v5e
topology: v5e:2x2
jax: 0.10.0
libtpu: 0.0.40
codegen_flags: <defaults>
</compile_context>

<pallas_src>
import functools
import math

import jax
import jax.numpy as jnp
from jax import lax
from jax.experimental import pallas as pl
from jax.experimental.pallas import tpu as pltpu

F32 = jnp.float32
BF16 = jnp.bfloat16


def _vmem():
    # whole-array blocks resident in VMEM (all shapes here are tiny)
    return pl.BlockSpec(memory_space=pltpu.MemorySpace.VMEM)


# ----------------------------- fused Pallas kernel -----------------------------

def _fused_forward_kernel(*refs, num_heads, num_layers, n_sh, dk, dv):
    (nf_ref, dist_ref, shrep_ref, src_ref, tgt_ref, batch_ref,
     emb_w_ref, emb_b_ref, proj_w_ref) = refs[:9]
    layer_refs = [refs[9 + 5 * li: 9 + 5 * (li + 1)] for li in range(num_layers)]
    out_ref = refs[9 + 5 * num_layers]

    nf = nf_ref[...]                          # (N, num_features)
    dist = dist_ref[...]                      # (E, 1)
    sh_rep = shrep_ref[...]                   # (E, n_sh * H * dkv), sh-major repeat
    n_nodes = nf.shape[0]
    n_edges = dist.shape[0]
    n_graphs, num_out = out_ref.shape
    dkv = dk + dv
    width = num_heads * dkv                   # lanes per spherical-harmonic path

    # One-hot incidence / pooling matrices built in-register from int32 indices
    # (no HBM one-hot arrays).  0/1 is exact in bf16 -> bf16 MXU operands.
    # TODO(synk): pass src/tgt/batch via SMEM scalar-prefetch at production E/N.
    sel_src = (lax.broadcasted_iota(jnp.int32, (n_edges, n_nodes), 1)
               == src_ref[...]).astype(BF16)                       # (E, N)
    adj = (lax.broadcasted_iota(jnp.int32, (n_nodes, n_edges), 0)
           == tgt_ref[...])                                        # (N, E) bool
    pool = (lax.broadcasted_iota(jnp.int32, (n_graphs, n_nodes), 0)
            == batch_ref[...]).astype(BF16)                        # (B, N)

    # Initial embedding: Linear(num_features -> C0 x 0e)
    feats0 = (jnp.dot(nf.astype(BF16), emb_w_ref[...].astype(BF16),
                      preferred_element_type=F32)
              + emb_b_ref[...])                                    # (N, C0)

    inv_sqrt_dk = 1.0 / math.sqrt(dk)

    x = feats0                    # layer-0 input, shared by both heads
    for li in range(num_layers):                                   # unrolled (2)
        qkv_w_ref, rw1_ref, rb1_ref, rw2_ref, rb2_ref = layer_refs[li]

        # Head-batched node projection: queries + all n_sh tensor-product paths
        # of keys+values for ALL heads in one lane-dense matmul.
        qkv = jnp.dot(x.astype(BF16), qkv_w_ref[...].astype(BF16),
                      preferred_element_type=F32)        # (N, H*dk + n_sh*H*dkv)
        q_all = qkv[:, :num_heads * dk]                  # (N, H*dk)
        nproj = qkv[:, num_heads * dk:]                  # (N, n_sh*H*dkv)

        # ONE one-hot gather per layer (contraction K=N, dominant matmul).
        eproj = jnp.dot(sel_src, nproj.astype(BF16),
                        preferred_element_type=F32)      # (E, n_sh*H*dkv)

        # Tensor product with edge spherical harmonics, vectorized:
        # full-width VPU multiply + (n_sh-1) lane-block adds.
        tmp = eproj * sh_rep
        kv = tmp[:, :width]
        for s in range(1, n_sh):
            kv = kv + tmp[:, s * width:(s + 1) * width]  # (E, H*dkv)

        # Radial MLP on distances, batched over heads (SiLU -> EUP slot).
        hid = dist * rw1_ref[...] + rb1_ref[...]         # (E, H*rh)
        hid = hid * jax.nn.sigmoid(hid)
        rad = (jnp.dot(hid.astype(BF16), rw2_ref[...].astype(BF16),
                       preferred_element_type=F32) + rb2_ref[...])  # (E, H*dkv)
        kv = kv * rad

        # Per-head dense attention over incoming edges (identical to gathering
        # q[tgt]): only the genuinely per-head part remains in this loop.
        x_parts = []
        for h in range(num_heads):                       # unrolled (2)
            q = q_all[:, h * dk:(h + 1) * dk].astype(BF16)
            k = kv[:, h * dkv:h * dkv + dk].astype(BF16)
            v = kv[:, h * dkv + dk:(h + 1) * dkv].astype(BF16)
            scores = lax.dot_general(q, k, (((1,), (1,)), ((), ())),
                                     preferred_element_type=F32) * inv_sqrt_dk
            scores = jnp.where(adj, scores, -1e30)
            m = jnp.max(scores, axis=1, keepdims=True)
            p = jnp.where(adj, jnp.exp(scores - m), 0.0)
            denom = jnp.maximum(jnp.sum(p, axis=1, keepdims=True), 1e-12)
            p = p * pl.reciprocal(denom, approx=True)    # EUP slot, not VPU divide
            x_parts.append(jnp.dot(p.astype(BF16), v,
                                   preferred_element_type=F32))     # (N, dv)
        x = jnp.concatenate(x_parts, axis=1)             # (N, H*dv)

    # global_add_pool + e3nn projection head on the concatenated head outputs.
    pooled = jnp.dot(pool, x.astype(BF16), preferred_element_type=F32)   # (B, H*dv)
    out = jnp.dot(pooled.astype(BF16), proj_w_ref[...].astype(BF16),
                  preferred_element_type=F32)                            # (B, out)
    out_ref[...] = out.astype(out_ref.dtype)


# ----------------------------- glue (plain JAX) -----------------------------

def spherical_harmonics_1x0e_1x1o(unit):
    """e3nn o3.spherical_harmonics for irreps 1x0e+1x1o, normalization='integral',
    l=1 component order (y, z, x)."""
    c0 = 1.0 / (2.0 * math.sqrt(math.pi))
    c1 = math.sqrt(3.0 / (4.0 * math.pi))
    x, y, z = unit[:, 0], unit[:, 1], unit[:, 2]
    sh0 = jnp.full((unit.shape[0], 1), c0, dtype=F32)
    sh1 = c1 * jnp.stack([y, z, x], axis=1)
    return jnp.concatenate([sh0, sh1], axis=1)


def se3_transformer_forward(params, pos, node_features, edge_index, batch, *, config):
    num_heads = config["num_heads"]
    num_layers = config["num_layers"]
    n_sh = config["n_sh"]
    dk = config["dk"]
    dv = config["dv"]
    num_graphs = config["num_graphs"]
    dkv = dk + dv
    num_out = params["proj_w"].shape[-1]

    n = node_features.shape[0]
    e = edge_index.shape[1]
    src = edge_index[0]
    tgt = edge_index[1]

    # get_relative_positions_and_distances + spherical harmonics (XLA glue)
    rel = pos[tgt] - pos[src]
    dist = jnp.sqrt(jnp.sum(rel * rel, axis=-1, keepdims=True))    # (E, 1)
    unit = rel / jnp.maximum(dist, 1e-12)                          # eps guard
    edge_sh = spherical_harmonics_1x0e_1x1o(unit)                  # (E, n_sh)
    # Pre-repeat sh across the head-batched projection width (sh-major layout).
    sh_rep = jnp.repeat(edge_sh, num_heads * dkv, axis=1)          # (E, n_sh*H*dkv)

    src_col = src.reshape(e, 1).astype(jnp.int32)   # negligible padding at this E
    tgt_row = tgt.reshape(1, e).astype(jnp.int32)
    batch_row = batch.reshape(1, n).astype(jnp.int32)

    inputs = [node_features.astype(F32), dist.astype(F32), sh_rep.astype(F32),
              src_col, tgt_row, batch_row,
              params["emb_w"], params["emb_b"], params["proj_w"]]
    for lp in params["layers"]:
        inputs += [lp["qkv_w"], lp["rw1"], lp["rb1"], lp["rw2"], lp["rb2"]]

    # Advisory cost hint so XLA overlaps the rel/dist/SH glue with the kernel.
    flops = 2 * n * node_features.shape[1] * params["emb_w"].shape[1]
    transcendentals = 0
    for lp in params["layers"]:
        in_dim, qkv_cols = lp["qkv_w"].shape
        rh_all, rad_cols = lp["rw2"].shape
        flops += 2 * n * in_dim * qkv_cols                       # node projection
        flops += 2 * e * n * (qkv_cols - num_heads * dk)         # one-hot gather
        flops += 2 * e * rh_all * rad_cols                       # radial MLP
        flops += num_heads * (2 * n * e * dk + 2 * n * e * dv)   # scores + attn out
        transcendentals += num_heads * n * e + e * rh_all        # exp + sigmoid
    flops += 2 * num_graphs * n * num_heads * dv
    flops += 2 * num_graphs * num_heads * dv * num_out
    bytes_accessed = sum(int(a.size) * a.dtype.itemsize for a in inputs)
    bytes_accessed += num_graphs * num_out * 4

    kern = functools.partial(
        _fused_forward_kernel,
        num_heads=num_heads, num_layers=num_layers, n_sh=n_sh, dk=dk, dv=dv)

    return pl.pallas_call(
        kern,
        out_shape=jax.ShapeDtypeStruct((num_graphs, num_out), F32),
        in_specs=[_vmem()] * len(inputs),
        out_specs=_vmem(),
        compiler_params=pltpu.CompilerParams(vmem_limit_bytes=32 * 1024 * 1024),
        cost_estimate=pl.CostEstimate(flops=int(flops),
                                      transcendentals=int(transcendentals),
                                      bytes_accessed=int(bytes_accessed)),
    )(*inputs)


# ----------------------------- parameter init -----------------------------

def _nrm(key, shape, fan_in):
    return (jax.random.normal(key, shape, F32) / math.sqrt(max(fan_in, 1))).astype(F32)


def init_params(key, *, num_features, num_channels, num_heads, num_layers,
                radial_hidden, num_out, n_sh, dk, dv, n_scalar_per_head):
    dkv = dk + dv
    keys = jax.random.split(key, 2 + num_layers)

    params = dict(
        emb_w=_nrm(keys[0], (num_features, num_channels), num_features),
        emb_b=jnp.zeros((1, num_channels), F32),
    )

    layers = []
    for li in range(num_layers):
        lkeys = jax.random.split(keys[2 + li], num_heads * (n_sh + 3))
        if li == 0:
            in_dim = num_channels                      # both heads read feats0
            fan = num_channels
            row_slices = [slice(0, in_dim)] * num_heads
        else:
            in_dim = num_heads * dv                    # block-diagonal over heads
            fan = dv
            row_slices = [slice(h * dv, (h + 1) * dv) for h in range(num_heads)]

        qkv_cols = num_heads * dk + n_sh * num_heads * dkv
        qkv_w = jnp.zeros((in_dim, qkv_cols), F32)
        rw1 = jnp.zeros((1, num_heads * radial_hidden), F32)
        rw2 = jnp.zeros((num_heads * radial_hidden, num_heads * dkv), F32)
        ki = 0
        for h in range(num_heads):
            rows = row_slices[h]
            # query weights (fused into the same projection matmul)
            qkv_w = qkv_w.at[rows, h * dk:(h + 1) * dk].set(
                _nrm(lkeys[ki], (fan, dk), fan)); ki += 1
            # tensor-product key+value path weights, sh-major column layout
            for s in range(n_sh):
                c0 = num_heads * dk + (s * num_heads + h) * dkv
                qkv_w = qkv_w.at[rows, c0:c0 + dkv].set(
                    _nrm(lkeys[ki], (fan, dkv), fan * n_sh)); ki += 1
            # radial MLP, head-batched (block-diagonal second layer)
            rw1 = rw1.at[:, h * radial_hidden:(h + 1) * radial_hidden].set(
                _nrm(lkeys[ki], (1, radial_hidden), 1)); ki += 1
            rw2 = rw2.at[h * radial_hidden:(h + 1) * radial_hidden,
                         h * dkv:(h + 1) * dkv].set(
                _nrm(lkeys[ki], (radial_hidden, dkv), radial_hidden)); ki += 1
        layers.append(dict(
            qkv_w=qkv_w, rw1=rw1,
            rb1=jnp.zeros((1, num_heads * radial_hidden), F32),
            rw2=rw2,
            rb2=jnp.zeros((1, num_heads * dkv), F32)))
    params["layers"] = layers

    # e3nn o3.Linear(concat_irreps -> num_out x 0e): only 0e channels connect,
    # 1/sqrt(fan_in) path normalization; stored on concatenated head outputs.
    fan_in = num_heads * n_scalar_per_head
    pkeys = jax.random.split(keys[1], num_heads)
    proj = jnp.zeros((num_heads * dv, num_out), F32)
    for h in range(num_heads):
        proj = proj.at[h * dv:h * dv + n_scalar_per_head, :].set(
            _nrm(pkeys[h], (n_scalar_per_head, num_out), fan_in))
    params["proj_w"] = proj
    return params


# ----------------------------- main -----------------------------

if __name__ == "__main__":
    # model config (construct_from_number_of_channels_and_lmax style)
    num_features = 5
    num_channels = 8           # initial embedding -> 8x0e
    l_max = 1
    num_attention_layers = 2
    num_attention_heads = 2
    radial_hidden = 16
    num_out = num_channels     # number_of_output_features

    n_sh = (l_max + 1) ** 2                    # 1x0e + 1x1o -> 4
    n_scalar_per_head = num_channels // 2      # 4x0e part of 4x0e+4x1o
    dk = dv = n_scalar_per_head * n_sh         # dim(4x0e + 4x1o) = 16

    # synthetic graph
    N, E, B = 16, 32, 2
    key = jax.random.PRNGKey(0)
    kpos, kfeat, ksrc, koff, kparam = jax.random.split(key, 5)
    pos = jax.random.normal(kpos, (N, 3), F32)
    node_features = jax.random.normal(kfeat, (N, num_features), F32)
    src = jax.random.randint(ksrc, (E,), 0, N)
    off = jax.random.randint(koff, (E,), 1, N)          # no self-loops (dist > 0)
    tgt = (src + off) % N
    edge_index = jnp.stack([src, tgt], axis=0).astype(jnp.int32)
    batch = jnp.concatenate(
        [jnp.zeros((N // 2,), jnp.int32), jnp.ones((N - N // 2,), jnp.int32)])

    params = init_params(
        kparam,
        num_features=num_features, num_channels=num_channels,
        num_heads=num_attention_heads, num_layers=num_attention_layers,
        radial_hidden=radial_hidden, num_out=num_out,
        n_sh=n_sh, dk=dk, dv=dv, n_scalar_per_head=n_scalar_per_head)

    config = dict(num_heads=num_attention_heads, num_layers=num_attention_layers,
                  n_sh=n_sh, dk=dk, dv=dv, num_graphs=B)
    forward = jax.jit(functools.partial(se3_transformer_forward, config=config))

    out = forward(params, pos, node_features, edge_index, batch)
    out = jax.block_until_ready(out)
    assert out.shape == (B, num_out), out.shape
    assert bool(jnp.all(jnp.isfinite(out)))
    print("KERNEL_OK")
</pallas_src>

<mosaic_0001>
module attributes {stable_mosaic.version = 11 : i64} {
  func.func @_fused_forward_kernel(%arg0: memref<16x5xf32, #tpu.memory_space<vmem>>, %arg1: memref<32x1xf32, #tpu.memory_space<vmem>>, %arg2: memref<32x256xf32, #tpu.memory_space<vmem>>, %arg3: memref<32x1xi32, #tpu.memory_space<vmem>>, %arg4: memref<1x32xi32, #tpu.memory_space<vmem>>, %arg5: memref<1x16xi32, #tpu.memory_space<vmem>>, %arg6: memref<5x8xf32, #tpu.memory_space<vmem>>, %arg7: memref<1x8xf32, #tpu.memory_space<vmem>>, %arg8: memref<32x8xf32, #tpu.memory_space<vmem>>, %arg9: memref<8x288xf32, #tpu.memory_space<vmem>>, %arg10: memref<1x32xf32, #tpu.memory_space<vmem>>, %arg11: memref<1x32xf32, #tpu.memory_space<vmem>>, %arg12: memref<32x64xf32, #tpu.memory_space<vmem>>, %arg13: memref<1x64xf32, #tpu.memory_space<vmem>>, %arg14: memref<32x288xf32, #tpu.memory_space<vmem>>, %arg15: memref<1x32xf32, #tpu.memory_space<vmem>>, %arg16: memref<1x32xf32, #tpu.memory_space<vmem>>, %arg17: memref<32x64xf32, #tpu.memory_space<vmem>>, %arg18: memref<1x64xf32, #tpu.memory_space<vmem>>, %arg19: memref<2x8xf32, #tpu.memory_space<vmem>>) attributes {dimension_semantics = [], scalar_prefetch = 0 : i64, scratch_operands = 0 : i64, tpu.core_type = #tpu.core_type<tc>} {
    %c0 = arith.constant 0 : index
    %c0_0 = arith.constant 0 : index
    %0 = vector.load %arg0[%c0, %c0_0] : memref<16x5xf32, #tpu.memory_space<vmem>>, vector<16x5xf32>
    %c0_1 = arith.constant 0 : index
    %c0_2 = arith.constant 0 : index
    %1 = vector.load %arg1[%c0_1, %c0_2] : memref<32x1xf32, #tpu.memory_space<vmem>>, vector<32x1xf32>
    %c0_3 = arith.constant 0 : index
    %c0_4 = arith.constant 0 : index
    %2 = vector.load %arg2[%c0_3, %c0_4] : memref<32x256xf32, #tpu.memory_space<vmem>>, vector<32x256xf32>
    %3 = tpu.iota {dimensions = array<i32: 1>} : vector<32x16xi32>
    %c0_5 = arith.constant 0 : index
    %c0_6 = arith.constant 0 : index
    %4 = vector.load %arg3[%c0_5, %c0_6] : memref<32x1xi32, #tpu.memory_space<vmem>>, vector<32x1xi32>
    %5 = vector.broadcast %4 : vector<32x1xi32> to vector<32x16xi32>
    %6 = arith.cmpi eq, %3, %5 : vector<32x16xi32>
    %7 = arith.extui %6 : vector<32x16xi1> to vector<32x16xi32>
    %8 = arith.sitofp %7 : vector<32x16xi32> to vector<32x16xf32>
    %9 = arith.truncf %8 : vector<32x16xf32> to vector<32x16xbf16>
    %10 = tpu.iota {dimensions = array<i32: 0>} : vector<16x32xi32>
    %c0_7 = arith.constant 0 : index
    %c0_8 = arith.constant 0 : index
    %11 = vector.load %arg4[%c0_7, %c0_8] : memref<1x32xi32, #tpu.memory_space<vmem>>, vector<1x32xi32>
    %12 = vector.broadcast %11 : vector<1x32xi32> to vector<16x32xi32>
    %13 = arith.cmpi eq, %10, %12 : vector<16x32xi32>
    %14 = tpu.iota {dimensions = array<i32: 0>} : vector<2x16xi32>
    %c0_9 = arith.constant 0 : index
    %c0_10 = arith.constant 0 : index
    %15 = vector.load %arg5[%c0_9, %c0_10] : memref<1x16xi32, #tpu.memory_space<vmem>>, vector<1x16xi32>
    %16 = vector.broadcast %15 : vector<1x16xi32> to vector<2x16xi32>
    %17 = arith.cmpi eq, %14, %16 : vector<2x16xi32>
    %18 = arith.extui %17 : vector<2x16xi1> to vector<2x16xi32>
    %19 = arith.sitofp %18 : vector<2x16xi32> to vector<2x16xf32>
    %20 = arith.truncf %19 : vector<2x16xf32> to vector<2x16xbf16>
    %21 = arith.truncf %0 : vector<16x5xf32> to vector<16x5xbf16>
    %c0_11 = arith.constant 0 : index
    %c0_12 = arith.constant 0 : index
    %22 = vector.load %arg6[%c0_11, %c0_12] : memref<5x8xf32, #tpu.memory_space<vmem>>, vector<5x8xf32>
    %23 = arith.truncf %22 : vector<5x8xf32> to vector<5x8xbf16>
    %cst = arith.constant dense<0.000000e+00> : vector<16x8xf32>
    %24 = tpu.matmul %21, %23, %cst {dimension_numbers = #tpu.dot_dimension_numbers<[1], [0], [0], [1], [0, 0, 1, 1], [], []>} : vector<16x5xbf16>, vector<5x8xbf16>, vector<16x8xf32> -> vector<16x8xf32>
    %c0_13 = arith.constant 0 : index
    %c0_14 = arith.constant 0 : index
    %25 = vector.load %arg7[%c0_13, %c0_14] : memref<1x8xf32, #tpu.memory_space<vmem>>, vector<1x8xf32>
    %26 = vector.broadcast %25 : vector<1x8xf32> to vector<16x8xf32>
    %27 = arith.addf %24, %26 : vector<16x8xf32>
    %28 = arith.truncf %27 : vector<16x8xf32> to vector<16x8xbf16>
    %c0_15 = arith.constant 0 : index
    %c0_16 = arith.constant 0 : index
    %29 = vector.load %arg9[%c0_15, %c0_16] : memref<8x288xf32, #tpu.memory_space<vmem>>, vector<8x288xf32>
    %30 = arith.truncf %29 : vector<8x288xf32> to vector<8x288xbf16>
    %cst_17 = arith.constant dense<0.000000e+00> : vector<16x288xf32>
    %31 = tpu.matmul %28, %30, %cst_17 {dimension_numbers = #tpu.dot_dimension_numbers<[1], [0], [0], [1], [0, 0, 1, 1], [], []>} : vector<16x8xbf16>, vector<8x288xbf16>, vector<16x288xf32> -> vector<16x288xf32>
    %32 = vector.extract_strided_slice %31 {offsets = [0, 0], sizes = [16, 32], strides = [1, 1]} : vector<16x288xf32> to vector<16x32xf32>
    %33 = vector.extract_strided_slice %31 {offsets = [0, 32], sizes = [16, 256], strides = [1, 1]} : vector<16x288xf32> to vector<16x256xf32>
    %34 = arith.truncf %33 : vector<16x256xf32> to vector<16x256xbf16>
    %cst_18 = arith.constant dense<0.000000e+00> : vector<32x256xf32>
    %35 = tpu.matmul %9, %34, %cst_18 {dimension_numbers = #tpu.dot_dimension_numbers<[1], [0], [0], [1], [0, 0, 1, 1], [], []>} : vector<32x16xbf16>, vector<16x256xbf16>, vector<32x256xf32> -> vector<32x256xf32>
    %36 = arith.mulf %35, %2 : vector<32x256xf32>
    %37 = vector.extract_strided_slice %36 {offsets = [0, 0], sizes = [32, 64], strides = [1, 1]} : vector<32x256xf32> to vector<32x64xf32>
    %38 = vector.extract_strided_slice %36 {offsets = [0, 64], sizes = [32, 64], strides = [1, 1]} : vector<32x256xf32> to vector<32x64xf32>
    %39 = arith.addf %37, %38 : vector<32x64xf32>
    %40 = vector.extract_strided_slice %36 {offsets = [0, 128], sizes = [32, 64], strides = [1, 1]} : vector<32x256xf32> to vector<32x64xf32>
    %41 = arith.addf %39, %40 : vector<32x64xf32>
    %42 = vector.extract_strided_slice %36 {offsets = [0, 192], sizes = [32, 64], strides = [1, 1]} : vector<32x256xf32> to vector<32x64xf32>
    %43 = arith.addf %41, %42 : vector<32x64xf32>
    %c0_19 = arith.constant 0 : index
    %c0_20 = arith.constant 0 : index
    %44 = vector.load %arg10[%c0_19, %c0_20] : memref<1x32xf32, #tpu.memory_space<vmem>>, vector<1x32xf32>
    %45 = vector.broadcast %1 : vector<32x1xf32> to vector<32x32xf32>
    %46 = vector.broadcast %44 : vector<1x32xf32> to vector<32x32xf32>
    %47 = arith.mulf %45, %46 : vector<32x32xf32>
    %c0_21 = arith.constant 0 : index
    %c0_22 = arith.constant 0 : index
    %48 = vector.load %arg11[%c0_21, %c0_22] : memref<1x32xf32, #tpu.memory_space<vmem>>, vector<1x32xf32>
    %49 = vector.broadcast %48 : vector<1x32xf32> to vector<32x32xf32>
    %50 = arith.addf %47, %49 : vector<32x32xf32>
    %51 = arith.negf %50 : vector<32x32xf32>
    %52 = math.exp %51 : vector<32x32xf32>
    %cst_23 = arith.constant 1.000000e+00 : f32
    %53 = vector.broadcast %cst_23 : f32 to vector<32x32xf32>
    %54 = arith.addf %53, %52 : vector<32x32xf32>
    %55 = arith.divf %53, %54 : vector<32x32xf32>
    %56 = arith.mulf %50, %55 : vector<32x32xf32>
    %57 = arith.truncf %56 : vector<32x32xf32> to vector<32x32xbf16>
    %c0_24 = arith.constant 0 : index
    %c0_25 = arith.constant 0 : index
    %58 = vector.load %arg12[%c0_24, %c0_25] : memref<32x64xf32, #tpu.memory_space<vmem>>, vector<32x64xf32>
    %59 = arith.truncf %58 : vector<32x64xf32> to vector<32x64xbf16>
    %cst_26 = arith.constant dense<0.000000e+00> : vector<32x64xf32>
    %60 = tpu.matmul %57, %59, %cst_26 {dimension_numbers = #tpu.dot_dimension_numbers<[1], [0], [0], [1], [0, 0, 1, 1], [], []>} : vector<32x32xbf16>, vector<32x64xbf16>, vector<32x64xf32> -> vector<32x64xf32>
    %c0_27 = arith.constant 0 : index
    %c0_28 = arith.constant 0 : index
    %61 = vector.load %arg13[%c0_27, %c0_28] : memref<1x64xf32, #tpu.memory_space<vmem>>, vector<1x64xf32>
    %62 = vector.broadcast %61 : vector<1x64xf32> to vector<32x64xf32>
    %63 = arith.addf %60, %62 : vector<32x64xf32>
    %64 = arith.mulf %43, %63 : vector<32x64xf32>
    %65 = vector.extract_strided_slice %32 {offsets = [0, 0], sizes = [16, 16], strides = [1, 1]} : vector<16x32xf32> to vector<16x16xf32>
    %66 = arith.truncf %65 : vector<16x16xf32> to vector<16x16xbf16>
    %67 = vector.extract_strided_slice %64 {offsets = [0, 0], sizes = [32, 16], strides = [1, 1]} : vector<32x64xf32> to vector<32x16xf32>
    %68 = arith.truncf %67 : vector<32x16xf32> to vector<32x16xbf16>
    %69 = vector.extract_strided_slice %64 {offsets = [0, 16], sizes = [32, 16], strides = [1, 1]} : vector<32x64xf32> to vector<32x16xf32>
    %70 = arith.truncf %69 : vector<32x16xf32> to vector<32x16xbf16>
    %cst_29 = arith.constant dense<0.000000e+00> : vector<16x32xf32>
    %71 = tpu.matmul %66, %68, %cst_29 {dimension_numbers = #tpu.dot_dimension_numbers<[1], [1], [0], [0], [0, 0, 1, 0], [], []>} : vector<16x16xbf16>, vector<32x16xbf16>, vector<16x32xf32> -> vector<16x32xf32>
    %cst_30 = arith.constant 2.500000e-01 : f32
    %72 = vector.broadcast %cst_30 : f32 to vector<16x32xf32>
    %73 = arith.mulf %71, %72 : vector<16x32xf32>
    %cst_31 = arith.constant -1.000000e+30 : f32
    %74 = vector.broadcast %cst_31 : f32 to vector<16x32xf32>
    %75 = arith.select %13, %73, %74 : vector<16x32xi1>, vector<16x32xf32>
    %cst_32 = arith.constant dense<0xFF800000> : vector<16xf32>
    %76 = vector.multi_reduction <maximumf>, %75, %cst_32 [1] : vector<16x32xf32> to vector<16xf32>
    %77 = vector.shape_cast %76 : vector<16xf32> to vector<16x1xf32>
    %78 = vector.broadcast %77 : vector<16x1xf32> to vector<16x32xf32>
    %79 = arith.subf %75, %78 : vector<16x32xf32>
    %80 = math.exp %79 : vector<16x32xf32>
    %cst_33 = arith.constant 0.000000e+00 : f32
    %81 = vector.broadcast %cst_33 : f32 to vector<16x32xf32>
    %82 = arith.select %13, %80, %81 : vector<16x32xi1>, vector<16x32xf32>
    %cst_34 = arith.constant dense<0.000000e+00> : vector<16xf32>
    %83 = vector.multi_reduction <add>, %82, %cst_34 [1] : vector<16x32xf32> to vector<16xf32>
    %84 = vector.shape_cast %83 : vector<16xf32> to vector<16x1xf32>
    %cst_35 = arith.constant 9.99999996E-13 : f32
    %85 = vector.broadcast %cst_35 : f32 to vector<16x1xf32>
    %86 = arith.maximumf %84, %85 : vector<16x1xf32>
    %87 = tpu.reciprocal %86 {approx = true} : vector<16x1xf32> -> vector<16x1xf32>
    %88 = vector.broadcast %87 : vector<16x1xf32> to vector<16x32xf32>
    %89 = arith.mulf %82, %88 : vector<16x32xf32>
    %90 = arith.truncf %89 : vector<16x32xf32> to vector<16x32xbf16>
    %cst_36 = arith.constant dense<0.000000e+00> : vector<16x16xf32>
    %91 = tpu.matmul %90, %70, %cst_36 {dimension_numbers = #tpu.dot_dimension_numbers<[1], [0], [0], [1], [0, 0, 1, 1], [], []>} : vector<16x32xbf16>, vector<32x16xbf16>, vector<16x16xf32> -> vector<16x16xf32>
    %92 = vector.extract_strided_slice %32 {offsets = [0, 16], sizes = [16, 16], strides = [1, 1]} : vector<16x32xf32> to vector<16x16xf32>
    %93 = arith.truncf %92 : vector<16x16xf32> to vector<16x16xbf16>
    %94 = vector.extract_strided_slice %64 {offsets = [0, 32], sizes = [32, 16], strides = [1, 1]} : vector<32x64xf32> to vector<32x16xf32>
    %95 = arith.truncf %94 : vector<32x16xf32> to vector<32x16xbf16>
    %96 = vector.extract_strided_slice %64 {offsets = [0, 48], sizes = [32, 16], strides = [1, 1]} : vector<32x64xf32> to vector<32x16xf32>
    %97 = arith.truncf %96 : vector<32x16xf32> to vector<32x16xbf16>
    %cst_37 = arith.constant dense<0.000000e+00> : vector<16x32xf32>
    %98 = tpu.matmul %93, %95, %cst_37 {dimension_numbers = #tpu.dot_dimension_numbers<[1], [1], [0], [0], [0, 0, 1, 0], [], []>} : vector<16x16xbf16>, vector<32x16xbf16>, vector<16x32xf32> -> vector<16x32xf32>
    %cst_38 = arith.constant 2.500000e-01 : f32
    %99 = vector.broadcast %cst_38 : f32 to vector<16x32xf32>
    %100 = arith.mulf %98, %99 : vector<16x32xf32>
    %cst_39 = arith.constant -1.000000e+30 : f32
    %101 = vector.broadcast %cst_39 : f32 to vector<16x32xf32>
    %102 = arith.select %13, %100, %101 : vector<16x32xi1>, vector<16x32xf32>
    %cst_40 = arith.constant dense<0xFF800000> : vector<16xf32>
    %103 = vector.multi_reduction <maximumf>, %102, %cst_40 [1] : vector<16x32xf32> to vector<16xf32>
    %104 = vector.shape_cast %103 : vector<16xf32> to vector<16x1xf32>
    %105 = vector.broadcast %104 : vector<16x1xf32> to vector<16x32xf32>
    %106 = arith.subf %102, %105 : vector<16x32xf32>
    %107 = math.exp %106 : vector<16x32xf32>
    %cst_41 = arith.constant 0.000000e+00 : f32
    %108 = vector.broadcast %cst_41 : f32 to vector<16x32xf32>
    %109 = arith.select %13, %107, %108 : vector<16x32xi1>, vector<16x32xf32>
    %cst_42 = arith.constant dense<0.000000e+00> : vector<16xf32>
    %110 = vector.multi_reduction <add>, %109, %cst_42 [1] : vector<16x32xf32> to vector<16xf32>
    %111 = vector.shape_cast %110 : vector<16xf32> to vector<16x1xf32>
    %cst_43 = arith.constant 9.99999996E-13 : f32
    %112 = vector.broadcast %cst_43 : f32 to vector<16x1xf32>
    %113 = arith.maximumf %111, %112 : vector<16x1xf32>
    %114 = tpu.reciprocal %113 {approx = true} : vector<16x1xf32> -> vector<16x1xf32>
    %115 = vector.broadcast %114 : vector<16x1xf32> to vector<16x32xf32>
    %116 = arith.mulf %109, %115 : vector<16x32xf32>
    %117 = arith.truncf %116 : vector<16x32xf32> to vector<16x32xbf16>
    %cst_44 = arith.constant dense<0.000000e+00> : vector<16x16xf32>
    %118 = tpu.matmul %117, %97, %cst_44 {dimension_numbers = #tpu.dot_dimension_numbers<[1], [0], [0], [1], [0, 0, 1, 1], [], []>} : vector<16x32xbf16>, vector<32x16xbf16>, vector<16x16xf32> -> vector<16x16xf32>
    %119 = tpu.concatenate %91, %118 in 1 : vector<16x16xf32>, vector<16x16xf32> -> vector<16x32xf32>
    %120 = arith.truncf %119 : vector<16x32xf32> to vector<16x32xbf16>
    %c0_45 = arith.constant 0 : index
    %c0_46 = arith.constant 0 : index
    %121 = vector.load %arg14[%c0_45, %c0_46] : memref<32x288xf32, #tpu.memory_space<vmem>>, vector<32x288xf32>
    %122 = arith.truncf %121 : vector<32x288xf32> to vector<32x288xbf16>
    %cst_47 = arith.constant dense<0.000000e+00> : vector<16x288xf32>
    %123 = tpu.matmul %120, %122, %cst_47 {dimension_numbers = #tpu.dot_dimension_numbers<[1], [0], [0], [1], [0, 0, 1, 1], [], []>} : vector<16x32xbf16>, vector<32x288xbf16>, vector<16x288xf32> -> vector<16x288xf32>
    %124 = vector.extract_strided_slice %123 {offsets = [0, 0], sizes = [16, 32], strides = [1, 1]} : vector<16x288xf32> to vector<16x32xf32>
    %125 = vector.extract_strided_slice %123 {offsets = [0, 32], sizes = [16, 256], strides = [1, 1]} : vector<16x288xf32> to vector<16x256xf32>
    %126 = arith.truncf %125 : vector<16x256xf32> to vector<16x256xbf16>
    %cst_48 = arith.constant dense<0.000000e+00> : vector<32x256xf32>
    %127 = tpu.matmul %9, %126, %cst_48 {dimension_numbers = #tpu.dot_dimension_numbers<[1], [0], [0], [1], [0, 0, 1, 1], [], []>} : vector<32x16xbf16>, vector<16x256xbf16>, vector<32x256xf32> -> vector<32x256xf32>
    %128 = arith.mulf %127, %2 : vector<32x256xf32>
    %129 = vector.extract_strided_slice %128 {offsets = [0, 0], sizes = [32, 64], strides = [1, 1]} : vector<32x256xf32> to vector<32x64xf32>
    %130 = vector.extract_strided_slice %128 {offsets = [0, 64], sizes = [32, 64], strides = [1, 1]} : vector<32x256xf32> to vector<32x64xf32>
    %131 = arith.addf %129, %130 : vector<32x64xf32>
    %132 = vector.extract_strided_slice %128 {offsets = [0, 128], sizes = [32, 64], strides = [1, 1]} : vector<32x256xf32> to vector<32x64xf32>
    %133 = arith.addf %131, %132 : vector<32x64xf32>
    %134 = vector.extract_strided_slice %128 {offsets = [0, 192], sizes = [32, 64], strides = [1, 1]} : vector<32x256xf32> to vector<32x64xf32>
    %135 = arith.addf %133, %134 : vector<32x64xf32>
    %c0_49 = arith.constant 0 : index
    %c0_50 = arith.constant 0 : index
    %136 = vector.load %arg15[%c0_49, %c0_50] : memref<1x32xf32, #tpu.memory_space<vmem>>, vector<1x32xf32>
    %137 = vector.broadcast %1 : vector<32x1xf32> to vector<32x32xf32>
    %138 = vector.broadcast %136 : vector<1x32xf32> to vector<32x32xf32>
    %139 = arith.mulf %137, %138 : vector<32x32xf32>
    %c0_51 = arith.constant 0 : index
    %c0_52 = arith.constant 0 : index
    %140 = vector.load %arg16[%c0_51, %c0_52] : memref<1x32xf32, #tpu.memory_space<vmem>>, vector<1x32xf32>
    %141 = vector.broadcast %140 : vector<1x32xf32> to vector<32x32xf32>
    %142 = arith.addf %139, %141 : vector<32x32xf32>
    %143 = arith.negf %142 : vector<32x32xf32>
    %144 = math.exp %143 : vector<32x32xf32>
    %cst_53 = arith.constant 1.000000e+00 : f32
    %145 = vector.broadcast %cst_53 : f32 to vector<32x32xf32>
    %146 = arith.addf %145, %144 : vector<32x32xf32>
    %147 = arith.divf %145, %146 : vector<32x32xf32>
    %148 = arith.mulf %142, %147 : vector<32x32xf32>
    %149 = arith.truncf %148 : vector<32x32xf32> to vector<32x32xbf16>
    %c0_54 = arith.constant 0 : index
    %c0_55 = arith.constant 0 : index
    %150 = vector.load %arg17[%c0_54, %c0_55] : memref<32x64xf32, #tpu.memory_space<vmem>>, vector<32x64xf32>
    %151 = arith.truncf %150 : vector<32x64xf32> to vector<32x64xbf16>
    %cst_56 = arith.constant dense<0.000000e+00> : vector<32x64xf32>
    %152 = tpu.matmul %149, %151, %cst_56 {dimension_numbers = #tpu.dot_dimension_numbers<[1], [0], [0], [1], [0, 0, 1, 1], [], []>} : vector<32x32xbf16>, vector<32x64xbf16>, vector<32x64xf32> -> vector<32x64xf32>
    %c0_57 = arith.constant 0 : index
    %c0_58 = arith.constant 0 : index
    %153 = vector.load %arg18[%c0_57, %c0_58] : memref<1x64xf32, #tpu.memory_space<vmem>>, vector<1x64xf32>
    %154 = vector.broadcast %153 : vector<1x64xf32> to vector<32x64xf32>
    %155 = arith.addf %152, %154 : vector<32x64xf32>
    %156 = arith.mulf %135, %155 : vector<32x64xf32>
    %157 = vector.extract_strided_slice %124 {offsets = [0, 0], sizes = [16, 16], strides = [1, 1]} : vector<16x32xf32> to vector<16x16xf32>
    %158 = arith.truncf %157 : vector<16x16xf32> to vector<16x16xbf16>
    %159 = vector.extract_strided_slice %156 {offsets = [0, 0], sizes = [32, 16], strides = [1, 1]} : vector<32x64xf32> to vector<32x16xf32>
    %160 = arith.truncf %159 : vector<32x16xf32> to vector<32x16xbf16>
    %161 = vector.extract_strided_slice %156 {offsets = [0, 16], sizes = [32, 16], strides = [1, 1]} : vector<32x64xf32> to vector<32x16xf32>
    %162 = arith.truncf %161 : vector<32x16xf32> to vector<32x16xbf16>
    %cst_59 = arith.constant dense<0.000000e+00> : vector<16x32xf32>
    %163 = tpu.matmul %158, %160, %cst_59 {dimension_numbers = #tpu.dot_dimension_numbers<[1], [1], [0], [0], [0, 0, 1, 0], [], []>} : vector<16x16xbf16>, vector<32x16xbf16>, vector<16x32xf32> -> vector<16x32xf32>
    %cst_60 = arith.constant 2.500000e-01 : f32
    %164 = vector.broadcast %cst_60 : f32 to vector<16x32xf32>
    %165 = arith.mulf %163, %164 : vector<16x32xf32>
    %cst_61 = arith.constant -1.000000e+30 : f32
    %166 = vector.broadcast %cst_61 : f32 to vector<16x32xf32>
    %167 = arith.select %13, %165, %166 : vector<16x32xi1>, vector<16x32xf32>
    %cst_62 = arith.constant dense<0xFF800000> : vector<16xf32>
    %168 = vector.multi_reduction <maximumf>, %167, %cst_62 [1] : vector<16x32xf32> to vector<16xf32>
    %169 = vector.shape_cast %168 : vector<16xf32> to vector<16x1xf32>
    %170 = vector.broadcast %169 : vector<16x1xf32> to vector<16x32xf32>
    %171 = arith.subf %167, %170 : vector<16x32xf32>
    %172 = math.exp %171 : vector<16x32xf32>
    %cst_63 = arith.constant 0.000000e+00 : f32
    %173 = vector.broadcast %cst_63 : f32 to vector<16x32xf32>
    %174 = arith.select %13, %172, %173 : vector<16x32xi1>, vector<16x32xf32>
    %cst_64 = arith.constant dense<0.000000e+00> : vector<16xf32>
    %175 = vector.multi_reduction <add>, %174, %cst_64 [1] : vector<16x32xf32> to vector<16xf32>
    %176 = vector.shape_cast %175 : vector<16xf32> to vector<16x1xf32>
    %cst_65 = arith.constant 9.99999996E-13 : f32
    %177 = vector.broadcast %cst_65 : f32 to vector<16x1xf32>
    %178 = arith.maximumf %176, %177 : vector<16x1xf32>
    %179 = tpu.reciprocal %178 {approx = true} : vector<16x1xf32> -> vector<16x1xf32>
    %180 = vector.broadcast %179 : vector<16x1xf32> to vector<16x32xf32>
    %181 = arith.mulf %174, %180 : vector<16x32xf32>
    %182 = arith.truncf %181 : vector<16x32xf32> to vector<16x32xbf16>
    %cst_66 = arith.constant dense<0.000000e+00> : vector<16x16xf32>
    %183 = tpu.matmul %182, %162, %cst_66 {dimension_numbers = #tpu.dot_dimension_numbers<[1], [0], [0], [1], [0, 0, 1, 1], [], []>} : vector<16x32xbf16>, vector<32x16xbf16>, vector<16x16xf32> -> vector<16x16xf32>
    %184 = vector.extract_strided_slice %124 {offsets = [0, 16], sizes = [16, 16], strides = [1, 1]} : vector<16x32xf32> to vector<16x16xf32>
    %185 = arith.truncf %184 : vector<16x16xf32> to vector<16x16xbf16>
    %186 = vector.extract_strided_slice %156 {offsets = [0, 32], sizes = [32, 16], strides = [1, 1]} : vector<32x64xf32> to vector<32x16xf32>
    %187 = arith.truncf %186 : vector<32x16xf32> to vector<32x16xbf16>
    %188 = vector.extract_strided_slice %156 {offsets = [0, 48], sizes = [32, 16], strides = [1, 1]} : vector<32x64xf32> to vector<32x16xf32>
    %189 = arith.truncf %188 : vector<32x16xf32> to vector<32x16xbf16>
    %cst_67 = arith.constant dense<0.000000e+00> : vector<16x32xf32>
    %190 = tpu.matmul %185, %187, %cst_67 {dimension_numbers = #tpu.dot_dimension_numbers<[1], [1], [0], [0], [0, 0, 1, 0], [], []>} : vector<16x16xbf16>, vector<32x16xbf16>, vector<16x32xf32> -> vector<16x32xf32>
    %cst_68 = arith.constant 2.500000e-01 : f32
    %191 = vector.broadcast %cst_68 : f32 to vector<16x32xf32>
    %192 = arith.mulf %190, %191 : vector<16x32xf32>
    %cst_69 = arith.constant -1.000000e+30 : f32
    %193 = vector.broadcast %cst_69 : f32 to vector<16x32xf32>
    %194 = arith.select %13, %192, %193 : vector<16x32xi1>, vector<16x32xf32>
    %cst_70 = arith.constant dense<0xFF800000> : vector<16xf32>
    %195 = vector.multi_reduction <maximumf>, %194, %cst_70 [1] : vector<16x32xf32> to vector<16xf32>
    %196 = vector.shape_cast %195 : vector<16xf32> to vector<16x1xf32>
    %197 = vector.broadcast %196 : vector<16x1xf32> to vector<16x32xf32>
    %198 = arith.subf %194, %197 : vector<16x32xf32>
    %199 = math.exp %198 : vector<16x32xf32>
    %cst_71 = arith.constant 0.000000e+00 : f32
    %200 = vector.broadcast %cst_71 : f32 to vector<16x32xf32>
    %201 = arith.select %13, %199, %200 : vector<16x32xi1>, vector<16x32xf32>
    %cst_72 = arith.constant dense<0.000000e+00> : vector<16xf32>
    %202 = vector.multi_reduction <add>, %201, %cst_72 [1] : vector<16x32xf32> to vector<16xf32>
    %203 = vector.shape_cast %202 : vector<16xf32> to vector<16x1xf32>
    %cst_73 = arith.constant 9.99999996E-13 : f32
    %204 = vector.broadcast %cst_73 : f32 to vector<16x1xf32>
    %205 = arith.maximumf %203, %204 : vector<16x1xf32>
    %206 = tpu.reciprocal %205 {approx = true} : vector<16x1xf32> -> vector<16x1xf32>
    %207 = vector.broadcast %206 : vector<16x1xf32> to vector<16x32xf32>
    %208 = arith.mulf %201, %207 : vector<16x32xf32>
    %209 = arith.truncf %208 : vector<16x32xf32> to vector<16x32xbf16>
    %cst_74 = arith.constant dense<0.000000e+00> : vector<16x16xf32>
    %210 = tpu.matmul %209, %189, %cst_74 {dimension_numbers = #tpu.dot_dimension_numbers<[1], [0], [0], [1], [0, 0, 1, 1], [], []>} : vector<16x32xbf16>, vector<32x16xbf16>, vector<16x16xf32> -> vector<16x16xf32>
    %211 = tpu.concatenate %183, %210 in 1 : vector<16x16xf32>, vector<16x16xf32> -> vector<16x32xf32>
    %212 = arith.truncf %211 : vector<16x32xf32> to vector<16x32xbf16>
    %cst_75 = arith.constant dense<0.000000e+00> : vector<2x32xf32>
    %213 = tpu.matmul %20, %212, %cst_75 {dimension_numbers = #tpu.dot_dimension_numbers<[1], [0], [0], [1], [0, 0, 1, 1], [], []>} : vector<2x16xbf16>, vector<16x32xbf16>, vector<2x32xf32> -> vector<2x32xf32>
    %214 = arith.truncf %213 : vector<2x32xf32> to vector<2x32xbf16>
    %c0_76 = arith.constant 0 : index
    %c0_77 = arith.constant 0 : index
    %215 = vector.load %arg8[%c0_76, %c0_77] : memref<32x8xf32, #tpu.memory_space<vmem>>, vector<32x8xf32>
    %216 = arith.truncf %215 : vector<32x8xf32> to vector<32x8xbf16>
    %cst_78 = arith.constant dense<0.000000e+00> : vector<2x8xf32>
    %217 = tpu.matmul %214, %216, %cst_78 {dimension_numbers = #tpu.dot_dimension_numbers<[1], [0], [0], [1], [0, 0, 1, 1], [], []>} : vector<2x32xbf16>, vector<32x8xbf16>, vector<2x8xf32> -> vector<2x8xf32>
    %c0_79 = arith.constant 0 : index
    %c0_80 = arith.constant 0 : index
    %218 = vector.load %arg19[%c0_79, %c0_80] : memref<2x8xf32, #tpu.memory_space<vmem>>, vector<2x8xf32>
    tpu.vector_store %arg19[%c0_79, %c0_80], %217 {strides = array<i32>} : memref<2x8xf32, #tpu.memory_space<vmem>>, vector<2x8xf32>,
    return
  }
}

</mosaic_0001>

<bundles_post_ra>
// kernel: se3_transformer_forward.1
= control target key start
LH: loop header
LB: loop body
LE: loop exit
PB: predicated region body
PF: predicated region fallthrough
CT: control target
= control target key end

     0   :  { %s2001_s0 = inlined_call_operand.vmem [shape: f32[16,5], index: 0, kind: input, shape index: {}]   ;;  %s2002_s1 = inlined_call_operand.vmem [shape: f32[32,1], index: 1, kind: input, shape index: {}]   ;;  %s2003_s2 = inlined_call_operand.vmem [shape: f32[32,256], index: 2, kind: input, shape index: {}]   ;;  %s2004_s3 = inlined_call_operand.vmem [shape: s32[32,1], index: 3, kind: input, shape index: {}]   ;;  %s2005_s4 = inlined_call_operand.vmem [shape: s32[1,32], index: 4, kind: input, shape index: {}]   ;;  %s2006_s5 = inlined_call_operand.vmem [shape: s32[1,16], index: 5, kind: input, shape index: {}]   ;;  %s2007_s6 = inlined_call_operand.vmem [shape: f32[5,8], index: 6, kind: input, shape index: {}]   ;;  %s2008_s7 = inlined_call_operand.vmem [shape: f32[1,8], index: 7, kind: input, shape index: {}]   ;;  %s2009_s8 = inlined_call_operand.vmem [shape: f32[32,8], index: 8, kind: input, shape index: {}]   ;;  %s2010_s9 = inlined_call_operand.vmem [shape: f32[8,288], index: 9, kind: input, shape index: {}]   ;;  %s2011_s10 = inlined_call_operand.vmem [shape: f32[1,32], index: 10, kind: input, shape index: {}]   ;;  %s2012_s11 = inlined_call_operand.vmem [shape: f32[1,32], index: 11, kind: input, shape index: {}]   ;;  %s2013_s12 = inlined_call_operand.vmem [shape: f32[32,64], index: 12, kind: input, shape index: {}]   ;;  %s2014_s13 = inlined_call_operand.vmem [shape: f32[1,64], index: 13, kind: input, shape index: {}]   ;;  %s2015_s14 = inlined_call_operand.vmem [shape: f32[32,288], index: 14, kind: input, shape index: {}]   ;;  %s2016_s15 = inlined_call_operand.vmem [shape: f32[1,32], index: 15, kind: input, shape index: {}]   ;;  %s2017_s16 = inlined_call_operand.vmem [shape: f32[1,32], index: 16, kind: input, shape index: {}]   ;;  %s2018_s17 = inlined_call_operand.vmem [shape: f32[32,64], index: 17, kind: input, shape index: {}]   ;;  %s2019_s18 = inlined_call_operand.vmem [shape: f32[1,64], index: 18, kind: input, shape index: {}]   ;;  %s2020_s19 = inlined_call_operand.hbm [shape: f32[2,8], index: 19, kind: output, shape index: {}]  }
   0x1   :  { %2025 = sst [smem:[#allocation5_spill]] %s2001_s0 }
   0x2   :  { %2026 = sst [smem:[#allocation6_spill]] %s2002_s1 }
   0x3   :  { %2027 = sst [smem:[#allocation7_spill]] %s2003_s2 }
   0x4   :  { %2028 = sst [smem:[#allocation8_spill]] %s2004_s3 }
   0x5   :  { %v124_v0 = vld [vmem:[%s2007_s6] sm:$0x1f]  ;;  %vm134_vm0 = vcmask 1041408   ;;  %vm135_vm1 = vcmask 1042432   ;;  %v1366_v2 = vmov 65535   ;;  %s2029_s1 = sld [smem:[#allocation5_spill]] }
   0x6   :  { %v125_v1 = vpack.c.bf16 %v124_v0, %v124_v0  ;;  %v136_v3 = vsel %vm134_vm0, 4294967295, %v1366_v2  ;;  %vm130_vm2 = vcmask 39936  }
   0x7   :  { %v137_v6 = vsel %vm135_vm1, %v136_v3, 0 }
   0x8   :  { %v139_v7 = vand.u32 %v137_v6, %v125_v1 }
   0xa   :  { %148 = vmatpush.bf16.msra.mxu0 %v139_v7 }
   0xb   :  { %v64_v4 = vld [vmem:[%s2029_s1] sm:$0xff]  ;;  %v65_v5 = vld [vmem:[%s2029_s1 + $0x8] sm:$0xff] }
   0xc   :  { %v123_v8 = vpack.c.bf16 %v65_v5, %v64_v4 }
   0xd   :  { %24 = vsyncpa [#allocation3], 0  ;;  %v156_v9 = vld [vmem:[%s2010_s9] sm:$0xff]  ;;  %v157_v10 = vld [vmem:[%s2010_s9 + $0x8] sm:$0xff]  ;;  %vm166_vm3 = vcmask 1043456   ;;  %s2030_s29 = sld [smem:[#allocation8_spill]] }
   0xe   :  { %1208 = vmatmul.msk.bf16.vlgmr.msra.gmra.mxu0 %vm130_vm2, %v123_v8  ;;  %v158_v11 = vld [vmem:[%s2010_s9 + $0x10] sm:$0xff]  ;;  %v159_v12 = vpack.c.bf16 %v156_v9, %v156_v9  ;;  %v160_v13 = vpack.c.bf16 %v157_v10, %v157_v10  ;;  %v1367_v19 = vmov 0   ;;  %s2031_s21 = sld [smem:[#allocation6_spill]]  ;;  %v1267_v23 = vld [vmem:[%s2008_s7] ss:$0 sm:$0xff]  ;;  %vm162_vm4 = vcmask 64512  }
   0xf   :  { %v161_v14 = vpack.c.bf16 %v158_v11, %v158_v11  ;;  %1254 = vset.pattern.permute.xlu0 %v1367_v19  ;;  %1255 = vset.pattern.permute.xlu2 %v1367_v19  ;;  %s1368_s7 = smov 96   ;;  %v1529_v44 = vld [vmem:[%s2011_s10] ss:$0 sm:$0xff]  ;;  %v452_v59 = vld [vmem:[%s2013_s12 + $0x10] sm:$0xff]  ;;  %v453_v60 = vld [vmem:[%s2013_s12 + $0x18] sm:$0xff]  ;;  %v78_v10 = vlaneseq  ;;  %vm230_vm7 = vcmask 785408  }
  0x10   :  { %v168_v15 = vsel %vm166_vm3, %v159_v12, 0  ;;  %v171_v16 = vsel %vm166_vm3, %v160_v13, 0  ;;  %1256 = vset.pattern.permute.xlu1 %v1367_v19  ;;  %v1534_v45 = vld [vmem:[%s2016_s15] ss:$0 sm:$0xff]  ;;  %v455_v61 = vpack.c.bf16 %v453_v60, %v452_v59  ;;  %v451_v1 = vld [vmem:[%s2013_s12 + $0x8] sm:$0xff]  ;;  %vm235_vm10 = vcmask 130048  }
  0x11   :  { %v174_v17 = vsel %vm166_vm3, %v161_v14, 0  ;;  %183 = vmatpush.bf16.msra.mxu1 %v168_v15  ;;  %197 = vmatpush.bf16.msra.mxu2 %v171_v16  ;;  %v1539_v47 = vld [vmem:[%s2012_s11] ss:$0 sm:$0xff]  ;;  %v1595_v16 = vand.u32 127, %v78_v10  ;;  %s2040_s26 = sld [smem:[#allocation7_spill]]  ;;  %s1370_s9 = smov 64  }
  0x12   :  { %211 = vmatpush.bf16.msra.mxu3 %v174_v17  ;;  %v1545_v49 = vld [vmem:[%s2017_s16] ss:$0 sm:$0xff]  ;;  %s1371_s6 = smov 112   ;;  %s1373_s2 = smov 16  }
  0x13   :  { %v80_v18 = vld [vmem:[%s2030_s29] sm:$0xff]  ;;  %v81_v20 = vld [vmem:[%s2030_s29 + $0x8] sm:$0xff]  ;;  %v82_v39 = vld [vmem:[%s2030_s29 + $0x10] sm:$0xff]  ;;  %s1374_s16 = smov [#allocation2]   ;;  %s1194_s25 = sshll.u32 %s2020_s19, 4  ;;  %s1195_s25 = int_to_ptr.hbm [resolvable:$true] %s1194_s25 }
  0x14   :  { %85 = vperm.xlu0 %1254, %v80_v18   ;;  %v67_v21 = vld [vmem:[%s2031_s21 + $0x8] sm:$0xff]  ;;  %v68_v24 = vld [vmem:[%s2031_s21 + $0x10] sm:$0xff]  ;;  %v66_v38 = vld [vmem:[%s2031_s21] sm:$0xff]  ;;  %s1192_s23 = sshll.u32 %s1374_s16, 4  ;;  %s1193_s23 = int_to_ptr.vmem [resolvable:$true] %s1192_s23 }
  0x15   :  { %v83_v40 = vld [vmem:[%s2030_s29 + $0x18] sm:$0xff]  ;;  %473 = vmatpush.bf16.msrb.mxu2 %v455_v61  ;;  %v450_v0 = vld [vmem:[%s2013_s12] sm:$0xff]  ;;  %s1372_s12 = smov 80  }
  0x16   :  { %v69_v41 = vld [vmem:[%s2031_s21 + $0x18] sm:$0xff]  ;;  %v454_v4 = vpack.c.bf16 %v451_v1, %v450_v0 }
  0x19   :  { %474 = vmatpush.bf16.msrb.mxu2 %v454_v4 }
  0x1c   :  { %88 = vperm.xlu0 %1254, %v81_v20  }
  0x24   :  { %340 = vperm.xlu0 %1254, %v67_v21  }
  0x2c   :  { %345 = vperm.xlu0 %1254, %v68_v24  }
  0x86   :  { %v86_v42 = vpop.permute.xlu0 %85 }
  0x87   :  { %vm96_vm5 = vcmp.eq.s32.totalorder %v1595_v16, %v86_v42 }
  0x8b   :  { %v150_v22 = vpop.f32.mrf.mxu0 }
  0x8c   :  { %v151_v26 = vadd.f32 %v1267_v23, %v150_v22 }
  0x8e   :  { %v89_v43 = vpop.permute.xlu0 %88 }
  0x8f   :  { %vm97_vm6 = vcmp.eq.s32.totalorder %v1595_v16, %v89_v43 }
  0x93   :  { %v152_v25 = vpop.f32.mrf.mxu0 }
  0x94   :  { %v153_v27 = vadd.f32 %v1267_v23, %v152_v25 }
  0x96   :  { %v155_v28 = vpack.c.bf16 %v153_v27, %v151_v26  ;;  %v341_v46 = vpop.permute.xlu0 %340  ;;  %v1369_v26 = vmov 0.0  }
  0x97   :  { %v357_v48 = vmul.f32 %v1529_v44, %v341_v46  ;;  %v839_v50 = vmul.f32 %v1534_v45, %v341_v46  ;;  %v1203_v27 = vsel %vm96_vm5, 1.0, %v1369_v26 }
  0x98   :  { %1209 = vmatmul.msk.bf16.vlgmr.msra.gmra.mxu1 %vm162_vm4, %v155_v28  ;;  %1210 = vmatmul.msk.bf16.vlgmr.msra.gmra.mxu2 %vm162_vm4, %v155_v28 }
  0x99   :  { %1211 = vmatmul.msk.bf16.vlgmr.msra.gmra.mxu3 %vm162_vm4, %v155_v28  ;;  %v1549_v51 = vadd.f32 %v1539_v47, %v357_v48  ;;  %v1552_v52 = vadd.f32 %v1545_v49, %v839_v50  ;;  %v1204_v28 = vsel %vm97_vm6, 1.0, %v1369_v26 }
  0x9b   :  { %v1217_v53 = vmul.f32 -1.442695, %v1549_v51  ;;  %v1234_v54 = vmul.f32 -1.442695, %v1552_v52 }
  0x9d   :  { %1276 = vpow2.f32 %v1217_v53 }
  0x9e   :  { %1278 = vpow2.f32 %v1234_v54  ;;  %v1586_v11 = vpop.permute.xlu0 %345 }
  0x9f   :  { %v358_v14 = vmul.f32 %v1529_v44, %v1586_v11 }
  0xa1   :  { %v1600_v20 = vadd.f32 %v1539_v47, %v358_v14 }
  0xa3   :  { %v1277_v55 = vpop.eup %1276 }
  0xa4   :  { %v1279_v57 = vpop.eup %1278  ;;  %v1556_v58 = vadd.f32 1.0, %v1277_v55 }
  0xa5   :  { %v1564_v62 = vadd.f32 1.0, %v1279_v57 }
  0xa6   :  { %1280 = vrcp.f32 %v1556_v58  ;;  %vm404_vm8 = vweird.f32 %v1556_v58 }
  0xa7   :  { %1282 = vrcp.f32 %v1564_v62  ;;  %vm886_vm12 = vweird.f32 %v1564_v62  ;;  %v892_v42 = vand.u32 2147483648, %v1564_v62 }
  0xac   :  { %v1582_v7 = vpop.eup %1280 }
  0xad   :  { %v1588_v12 = vpop.eup %1282  ;;  %v400_v13 = vmul.f32 %v1582_v7, %v1556_v58  ;;  %vm405_vm9 = vweird.f32 %v1582_v7 }
  0xae   :  { %v882_v17 = vmul.f32 %v1588_v12, %v1564_v62  ;;  %vm1624_vm11 = vmor %vm404_vm8, %vm405_vm9  ;;  %vm887_vm13 = vweird.f32 %v1588_v12 }
  0xaf   :  { %v401_v18 = vsub.f32 1.0, %v400_v13  ;;  %vm1650_vm0 = vmor %vm886_vm12, %vm887_vm13  ;;  %vm460_vm13 = vcmask 261120  }
  0xb0   :  { %v883_v23 = vsub.f32 1.0, %v882_v17 }
  0xb1   :  { %v402_v25 = vmul.f32 %v1582_v7, %v401_v18 }
 0x115   :  { %v185_v29 = vpop.f32.mrf.mxu1 }
 0x11b   :  { %v199_v30 = vpop.f32.mrf.mxu2 }
 0x11c   :  { %v213_v31 = vpop.f32.mrf.mxu3 }
 0x11d   :  { %v187_v32 = vpop.f32.mrf.mxu1 }
 0x11e   :  { %v1508_v33 = vpack.c.bf16 %v187_v32, %v185_v29  ;;  %v1218_v29 = vmul.f32 -1.442695, %v1600_v20 }
 0x120   :  { %224 = vrot.lane.b32.xlu1 %v1508_v33, %s1368_s7 }
 0x123   :  { %v201_v34 = vpop.f32.mrf.mxu2 }
 0x124   :  { %v215_v35 = vpop.f32.mrf.mxu3  ;;  %v219_v37 = vpack.c.bf16 %v201_v34, %v199_v30  ;;  %v408_v34 = vand.u32 2147483647, %v1556_v58 }
 0x125   :  { %v220_v36 = vpack.c.bf16 %v215_v35, %v213_v31  ;;  %v410_v35 = vand.u32 2147483648, %v1556_v58 }
 0x126   :  { %vm1636_vm14 = vcmp.eq.f32.partialorder %v408_v34, 8.507059e+37 }
 0x127   :  { %228 = vrot.lane.b32.xlu2 %v220_v36, %s1368_s7  ;;  %v884_v36 = vmul.f32 %v1588_v12, %v883_v23  ;;  %v411_v48 = vor.u32 1.1754944e-38, %v410_v35 }
 0x128   :  { %226 = vrot.lane.b32.xlu1 %v219_v37, %s1368_s7  ;;  %v1621_v37 = vpack.c.bf16 %v1204_v28, %v1203_v27 }
 0x129   :  { %v885_v50 = vadd.f32 %v1588_v12, %v884_v36 }
 0x12b   :  { %v889_v4 = vsel %vm1650_vm0, %v1588_v12, %v885_v50 }
 0x12f   :  { %335 = vperm.xlu2 %1255, %v66_v38   ;;  %v403_v38 = vadd.f32 %v1582_v7, %v402_v25 }
 0x130   :  { %91 = vperm.xlu1 %1256, %v82_v39  }
 0x131   :  { %v407_v54 = vsel %vm1624_vm11, %v1582_v7, %v403_v38  ;;  %v1709_v7 = vld [vmem:[%s2040_s26 + $0x28] sm:$0xff] }
 0x132   :  { %v412_v13 = vsel %vm1636_vm14, %v411_v48, %v407_v54 }
 0x137   :  { %94 = vperm.xlu2 %1255, %v83_v40  }
 0x138   :  { %350 = vperm.xlu1 %1256, %v69_v41   ;;  %v890_v41 = vand.u32 2147483647, %v1564_v62 }
 0x13a   :  { %vm891_vm4 = vcmp.eq.f32.partialorder %v890_v41, 8.507059e+37 }
 0x181   :  { %v229_v56 = vpop.permute.xlu2 %228 }
 0x189   :  { %v336_v63 = vpop.permute.xlu2 %335 }
 0x18a   :  { %v356_v2 = vmul.f32 %v1529_v44, %v336_v63  ;;  %v838_v3 = vmul.f32 %v1534_v45, %v336_v63 }
 0x18c   :  { %v1577_v5 = vadd.f32 %v1539_v47, %v356_v2  ;;  %v1580_v6 = vadd.f32 %v1545_v49, %v838_v3  ;;  %v893_v2 = vor.u32 1.1754944e-38, %v892_v42 }
 0x18e   :  { %v1216_v8 = vmul.f32 -1.442695, %v1577_v5  ;;  %v1233_v9 = vmul.f32 -1.442695, %v1580_v6  ;;  %v894_v12 = vsel %vm891_vm4, %v893_v2, %v889_v4  ;;  %v1704_v4 = vld [vmem:[%s2040_s26 + $0x20] sm:$0xff] }
 0x190   :  { %1284 = vpow2.f32 %v1216_v8 }
 0x191   :  { %1286 = vpow2.f32 %v1233_v9  ;;  %v95_v3 = vpop.permute.xlu2 %94 }
 0x192   :  { %v225_v15 = vpop.permute.xlu1 %224  ;;  %vm99_vm11 = vcmp.eq.s32.totalorder %v1595_v16, %v95_v3 }
 0x193   :  { %v1206_v27 = vsel %vm99_vm11, 1.0, %v1369_v26 }
 0x196   :  { %v1285_v19 = vpop.eup %1284 }
 0x197   :  { %v1287_v21 = vpop.eup %1286  ;;  %v1604_v22 = vadd.f32 1.0, %v1285_v19 }
 0x198   :  { %v1606_v24 = vadd.f32 1.0, %v1287_v21  ;;  %v445_v21 = vmul.f32 %v412_v13, %v1549_v51 }
 0x199   :  { %1288 = vrcp.f32 %v1604_v22  ;;  %vm389_vm15 = vweird.f32 %v1604_v22  ;;  %v395_v55 = vand.u32 2147483648, %v1604_v22  ;;  %v393_v59 = vand.u32 2147483647, %v1604_v22 }
 0x19a   :  { %1290 = vrcp.f32 %v1606_v24  ;;  %v227_v30 = vpop.permute.xlu1 %226  ;;  %v877_v60 = vand.u32 2147483648, %v1606_v24  ;;  %vm871_vm2 = vweird.f32 %v1606_v24  ;;  %v875_v0 = vand.u32 2147483647, %v1606_v24 }
 0x19b   :  { %v231_v31 = vsel %vm230_vm7, %v225_v15, %v227_v30  ;;  %v232_v32 = vsel %vm230_vm7, %v227_v30, %v229_v56  ;;  %1292 = vpow2.f32 %v1218_v29  ;;  %v396_v8 = vor.u32 1.1754944e-38, %v395_v55 }
 0x19c   :  { %249 = vmatpush.bf16.msrb.mxu0 %v231_v31  ;;  %268 = vmatpush.bf16.msrb.mxu1 %v232_v32  ;;  %vm394_vm6 = vcmp.eq.f32.partialorder %v393_v59, 8.507059e+37  ;;  %v878_v15 = vor.u32 1.1754944e-38, %v877_v60  ;;  %vm876_vm9 = vcmp.eq.f32.partialorder %v875_v0, 8.507059e+37 }
 0x19f   :  { %v1289_v40 = vpop.eup %1288  ;;  %1212 = vmatmul.msk.bf16.vlgmr.msrb.gmra.mxu0 %vm235_vm10, %v1621_v37  ;;  %1214 = vmatmul.msk.bf16.vlgmr.msrb.gmra.mxu1 %vm235_vm10, %v1621_v37 }
 0x1a0   :  { %v1291_v43 = vpop.eup %1290  ;;  %v385_v53 = vmul.f32 %v1289_v40, %v1604_v22  ;;  %vm390_vm1 = vweird.f32 %v1289_v40 }
 0x1a1   :  { %v867_v56 = vmul.f32 %v1291_v43, %v1606_v24  ;;  %vm872_vm3 = vweird.f32 %v1291_v43  ;;  %v1293_v1 = vpop.eup %1292  ;;  %vm1663_vm5 = vmor %vm389_vm15, %vm390_vm1 }
 0x1a2   :  { %v386_v58 = vsub.f32 1.0, %v385_v53  ;;  %v92_v61 = vpop.permute.xlu1 %91  ;;  %vm873_vm8 = vmor %vm871_vm2, %vm872_vm3  ;;  %v382_v18 = vadd.f32 1.0, %v1293_v1 }
 0x1a3   :  { %v868_v63 = vsub.f32 1.0, %v867_v56  ;;  %vm98_vm12 = vcmp.eq.s32.totalorder %v1595_v16, %v92_v61  ;;  %v1682_v16 = vmul.f32 %v894_v12, %v1552_v52 }
 0x1a4   :  { %v387_v62 = vmul.f32 %v1289_v40, %v386_v58  ;;  %v1205_v28 = vsel %vm98_vm12, 1.0, %v1369_v26  ;;  %1294 = vrcp.f32 %v382_v18  ;;  %vm419_vm14 = vweird.f32 %v382_v18 }
 0x1a5   :  { %v869_v9 = vmul.f32 %v1291_v43, %v868_v63  ;;  %v1691_v32 = vpack.c.bf16 %v1206_v27, %v1205_v28  ;;  %v425_v41 = vand.u32 2147483648, %v382_v18  ;;  %v1753_v28 = vld [vmem:[%s2040_s26 + $0x18] sm:$0xff] }
 0x1a6   :  { %v388_v14 = vadd.f32 %v1289_v40, %v387_v62 }
 0x1a7   :  { %v870_v17 = vadd.f32 %v1291_v43, %v869_v9  ;;  %v426_v48 = vor.u32 1.1754944e-38, %v425_v41 }
 0x1a8   :  { %v392_v19 = vsel %vm1663_vm5, %v1289_v40, %v388_v14  ;;  %v423_v40 = vand.u32 2147483647, %v382_v18  ;;  %v1718_v14 = vld [vmem:[%s2040_s26 + $0x10] sm:$0xff] }
 0x1a9   :  { %v397_v22 = vsel %vm394_vm6, %v396_v8, %v392_v19  ;;  %v874_v23 = vsel %vm873_vm8, %v1291_v43, %v870_v17  ;;  %v1728_v17 = vld [vmem:[%s2040_s26 + $0x38] sm:$0xff] }
 0x1aa   :  { %v444_v25 = vmul.f32 %v397_v22, %v1577_v5  ;;  %v879_v24 = vsel %vm876_vm9, %v878_v15, %v874_v23  ;;  %v1679_v29 = vpop.permute.xlu1 %350  ;;  %vm424_vm1 = vcmp.eq.f32.partialorder %v423_v40, 8.507059e+37  ;;  %v1723_v15 = vld [vmem:[%s2040_s26 + $0x30] sm:$0xff]  ;;  %v1739_v23 = vld [vmem:[%s2040_s26 + $0x8] sm:$0xff]  ;;  %v1273_v40 = vld [vmem:[%s2014_s13] ss:$0 sm:$0xff] }
 0x1ab   :  { %v1685_v30 = vmul.f32 %v879_v24, %v1580_v6  ;;  %v359_v51 = vmul.f32 %v1529_v44, %v1679_v29  ;;  %v1295_v44 = vpop.eup %1294 }
 0x1ac   :  { %v448_v31 = vpack.c.bf16 %v445_v21, %v444_v25  ;;  %v415_v6 = vmul.f32 %v1295_v44, %v382_v18  ;;  %vm420_vm15 = vweird.f32 %v1295_v44  ;;  %v1744_v25 = vld [vmem:[%s2040_s26] sm:$0xff] }
 0x1ad   :  { %v930_v5 = vpack.c.bf16 %v1682_v16, %v1685_v30  ;;  %v367_v34 = vadd.f32 %v1539_v47, %v359_v51  ;;  %vm421_vm0 = vmor %vm419_vm14, %vm420_vm15 }
 0x1ae   :  { %1220 = vmatmul.msk.bf16.vlgmr.msrb.gmra.mxu2 %vm460_vm13, %v448_v31  ;;  %v416_v38 = vsub.f32 1.0, %v415_v6 }
 0x1af   :  { %v1219_v52 = vmul.f32 -1.442695, %v367_v34  ;;  %1213 = vmatmul.msk.bf16.gmra.mxu0 %vm235_vm10, %v1691_v32  ;;  %1215 = vmatmul.msk.bf16.gmra.mxu1 %vm235_vm10, %v1691_v32 }
 0x1b0   :  { %v417_v39 = vmul.f32 %v1295_v44, %v416_v38 }
 0x1b1   :  { %1296 = vpow2.f32 %v1219_v52 }
 0x1b2   :  { %v418_v42 = vadd.f32 %v1295_v44, %v417_v39 }
 0x1b4   :  { %v422_v53 = vsel %vm421_vm0, %v1295_v44, %v418_v42 }
 0x1b5   :  { %v427_v57 = vsel %vm424_vm1, %v426_v48, %v422_v53 }
 0x1b6   :  { %v446_v61 = vmul.f32 %v427_v57, %v1600_v20 }
 0x1b7   :  { %v1297_v35 = vpop.eup %1296 }
 0x1b8   :  { %v383_v36 = vadd.f32 1.0, %v1297_v35 }
 0x1ba   :  { %1298 = vrcp.f32 %v383_v36  ;;  %v440_v50 = vand.u32 2147483648, %v383_v36  ;;  %v438_v55 = vand.u32 2147483647, %v383_v36  ;;  %vm434_vm3 = vweird.f32 %v383_v36 }
 0x1bc   :  { %v441_v58 = vor.u32 1.1754944e-38, %v440_v50  ;;  %vm439_vm5 = vcmp.eq.f32.partialorder %v438_v55, 8.507059e+37 }
 0x1c0   :  { %v1299_v47 = vpop.eup %1298 }
 0x1c1   :  { %v430_v43 = vmul.f32 %v1299_v47, %v383_v36  ;;  %vm435_vm2 = vweird.f32 %v1299_v47 }
 0x1c2   :  { %vm436_vm4 = vmor %vm434_vm3, %vm435_vm2 }
 0x1c3   :  { %v431_v46 = vsub.f32 1.0, %v430_v43 }
 0x1c5   :  { %v432_v54 = vmul.f32 %v1299_v47, %v431_v46 }
 0x1c7   :  { %v433_v56 = vadd.f32 %v1299_v47, %v432_v54 }
 0x1c9   :  { %v437_v59 = vsel %vm436_vm4, %v1299_v47, %v433_v56 }
 0x1ca   :  { %v442_v60 = vsel %vm439_vm5, %v441_v58, %v437_v59 }
 0x1cb   :  { %v447_v63 = vmul.f32 %v442_v60, %v367_v34 }
 0x1cd   :  { %v449_v0 = vpack.c.bf16 %v447_v63, %v446_v61 }
 0x1cf   :  { %1221 = vmatmul.msk.bf16.gmra.mxu2 %vm460_vm13, %v449_v0 }
 0x21c   :  { %v251_v1 = vpop.f32.mrf.mxu0  ;;  %v270_v2 = vpop.f32.mrf.mxu1 }
 0x21d   :  { %v281_v24 = vmul.f32 %v270_v2, %v1739_v23  ;;  %v280_v27 = vmul.f32 %v251_v1, %v1744_v25 }
 0x224   :  { %v253_v62 = vpop.f32.mrf.mxu0  ;;  %v272_v3 = vpop.f32.mrf.mxu1 }
 0x225   :  { %v282_v19 = vmul.f32 %v253_v62, %v1718_v14  ;;  %v283_v51 = vmul.f32 %v272_v3, %v1753_v28 }
 0x22c   :  { %v256_v8 = vpop.f32.mrf.mxu0  ;;  %v275_v20 = vpop.f32.mrf.mxu1 }
 0x22d   :  { %v284_v9 = vmul.f32 %v256_v8, %v1704_v4  ;;  %v285_v13 = vmul.f32 %v275_v20, %v1709_v7 }
 0x22f   :  { %320 = vrot.lane.b32.xlu1 %v285_v13, %s1370_s9  ;;  %296 = vrot.lane.b32.xlu2 %v284_v9, %s1370_s9 }
 0x231   :  { %v476_v31 = vpop.f32.mrf.mxu2 }
 0x232   :  { %v477_v62 = vadd.f32 %v1273_v40, %v476_v31 }
 0x234   :  { %v258_v12 = vpop.f32.mrf.mxu0  ;;  %v277_v18 = vpop.f32.mrf.mxu1 }
 0x235   :  { %v286_v21 = vmul.f32 %v258_v12, %v1723_v15  ;;  %v287_v22 = vmul.f32 %v277_v18, %v1728_v17 }
 0x237   :  { %294 = vrot.lane.b32.xlu1 %v282_v19, %s1370_s9  ;;  %322 = vrot.lane.b32.xlu2 %v287_v22, %s1370_s9 }
 0x238   :  { %298 = vrot.lane.b32.xlu0 %v286_v21, %s1370_s9 }
 0x239   :  { %v478_v34 = vpop.f32.mrf.mxu2 }
 0x23a   :  { %v479_v3 = vadd.f32 %v1273_v40, %v478_v34 }
 0x23f   :  { %316 = vrot.lane.b32.xlu2 %v281_v24, %s1370_s9 }
 0x240   :  { %292 = vrot.lane.b32.xlu0 %v280_v27, %s1370_s9 }
 0x248   :  { %318 = vrot.lane.b32.xlu0 %v283_v51, %s1370_s9 }
 0x250   :  { %571 = vrot.lane.b32.xlu0 %v1508_v33, %s1371_s6 }
 0x252   :  { %v481_v52 = vpop.f32.mrf.mxu2 }
 0x253   :  { %v482_v46 = vadd.f32 %v1273_v40, %v481_v52 }
 0x25a   :  { %v483_v47 = vpop.f32.mrf.mxu2 }
 0x25b   :  { %v484_v48 = vadd.f32 %v1273_v40, %v483_v47 }
 0x289   :  { %v297_v44 = vpop.permute.xlu2 %296 }
 0x28a   :  { %v306_v6 = vadd.f32 %v297_v44, %v284_v9 }
 0x28c   :  { %v310_v38 = vadd.f32 %v306_v6, %v285_v13 }
 0x291   :  { %v323_v43 = vpop.permute.xlu2 %322 }
 0x299   :  { %v317_v63 = vpop.permute.xlu2 %316 }
 0x2a1   :  { %v321_v35 = vpop.permute.xlu1 %320 }
 0x2a2   :  { %v330_v41 = vadd.f32 %v321_v35, %v310_v38 }
 0x2a4   :  { %v488_v53 = vmul.f32 %v482_v46, %v330_v41 }
 0x2a9   :  { %v295_v55 = vpop.permute.xlu1 %294 }
 0x2aa   :  { %v299_v36 = vpop.permute.xlu0 %298  ;;  %v305_v59 = vadd.f32 %v295_v55, %v282_v19 }
 0x2ab   :  { %v307_v39 = vadd.f32 %v299_v36, %v286_v21 }
 0x2ac   :  { %v309_v1 = vadd.f32 %v305_v59, %v283_v51  ;;  %v1779_v51 = vshrl.u32 %v78_v10, 7 }
 0x2ad   :  { %v311_v42 = vadd.f32 %v307_v39, %v287_v22 }
 0x2ae   :  { %v112_v38 = vadd.s32 8, %v1779_v51 }
 0x2af   :  { %v331_v50 = vadd.f32 %v323_v43, %v311_v42 }
 0x2b1   :  { %v489_v54 = vmul.f32 %v484_v48, %v331_v50 }
 0x2b2   :  { %v293_v56 = vpop.permute.xlu0 %292 }
 0x2b3   :  { %v304_v57 = vadd.f32 %v293_v56, %v280_v27  ;;  %v491_v58 = vpack.c.bf16 %v489_v54, %v488_v53  ;;  %v1268_v27 = vld [vmem:[%s2005_s4] ss:$0 sm:$0xff] }
 0x2b4   :  { %vm1782_vm6 = vcmp.eq.s32.totalorder %v1779_v51, %v1268_v27  ;;  %vm1795_vm8 = vcmp.eq.s32.totalorder %v112_v38, %v1268_v27 }
 0x2b5   :  { %v308_v60 = vadd.f32 %v304_v57, %v281_v24  ;;  %575 = vrot.lane.b32.xlu1 %v491_v58, %s1368_s7  ;;  %v499_v61 = vsel %vm235_vm10, %v491_v58, 0 }
 0x2b6   :  { %507 = vmatpush.bf16.xpose.msrb.mxu3 %v499_v61 }
 0x2b7   :  { %v328_v0 = vadd.f32 %v317_v63, %v308_v60 }
 0x2b9   :  { %v486_v20 = vmul.f32 %v477_v62, %v328_v0 }
 0x2ba   :  { %v319_v2 = vpop.permute.xlu0 %318 }
 0x2bb   :  { %v329_v8 = vadd.f32 %v319_v2, %v309_v1 }
 0x2bd   :  { %v487_v9 = vmul.f32 %v479_v3, %v329_v8 }
 0x2bf   :  { %v1764_v13 = vpack.c.bf16 %v487_v9, %v486_v20 }
 0x2c1   :  { %573 = vrot.lane.b32.xlu2 %v1764_v13, %s1368_s7  ;;  %v496_v12 = vsel %vm235_vm10, %v1764_v13, 0 }
 0x2c2   :  { %508 = vmatpush.bf16.xpose.msrb.mxu3 %v496_v12  ;;  %v572_v24 = vpop.permute.xlu0 %571 }
 0x2c9   :  { %1222 = vmatmul.msk.bf16.vlgmr.msrb.gmra.mxu3 %vm235_vm10, %v1508_v33 }
 0x31b   :  { %v574_v21 = vpop.permute.xlu2 %573 }
 0x31c   :  { %v581_v22 = vsel %vm235_vm10, %v574_v21, 0 }
 0x327   :  { %v576_v18 = vpop.permute.xlu1 %575 }
 0x328   :  { %v584_v19 = vsel %vm235_vm10, %v576_v18, 0 }
 0x329   :  { %592 = vmatpush.bf16.xpose.msra.mxu0 %v584_v19 }
 0x331   :  { %593 = vmatpush.bf16.xpose.msra.mxu0 %v581_v22 }
 0x338   :  { %1224 = vmatmul.msk.bf16.vlgmr.msra.gmra.mxu0 %vm235_vm10, %v572_v24 }
 0x34c   :  { %v510_v31 = vpop.f32.mrf.mxu3 }
 0x34d   :  { %v515_v34 = vmul.f32 0.25, %v510_v31 }
 0x34f   :  { %v517_v52 = vsel %vm1782_vm6, %v515_v34, -1e+30 }
 0x350   :  { %v519_v44 = vsel %vm460_vm13, %v517_v52, -inf }
 0x351   :  { %520 = vmax.xlane.f32.xlu0 %v519_v44 }
 0x354   :  { %v512_v40 = vpop.f32.mrf.mxu3 }
 0x355   :  { %v516_v46 = vmul.f32 0.25, %v512_v40 }
 0x357   :  { %v518_v53 = vsel %vm1795_vm8, %v516_v46, -1e+30 }
 0x358   :  { %v522_v55 = vsel %vm460_vm13, %v518_v53, -inf }
 0x365   :  { %633 = vrot.lane.b32.xlu0 %v491_v58, %s1372_s12 }
 0x36d   :  { %550 = vrot.lane.b32.xlu0 %v491_v58, %s1371_s6 }
 0x3b5   :  { %v595_v10 = vpop.f32.mrf.mxu0 }
 0x3b6   :  { %v600_v6 = vmul.f32 0.25, %v595_v10 }
 0x3b8   :  { %v602_v35 = vsel %vm1782_vm6, %v600_v6, -1e+30 }
 0x3b9   :  { %v604_v36 = vsel %vm460_vm13, %v602_v35, -inf }
 0x3ba   :  { %605 = vmax.xlane.f32.xlu1 %v604_v36 }
 0x3bd   :  { %v597_v39 = vpop.f32.mrf.mxu0 }
 0x3be   :  { %v601_v47 = vmul.f32 0.25, %v597_v39 }
 0x3c0   :  { %v603_v42 = vsel %vm1795_vm8, %v601_v47, -1e+30 }
 0x3c1   :  { %v607_v43 = vsel %vm460_vm13, %v603_v42, -inf }
 0x3c2   :  { %608 = vmax.xlane.f32.xlu2 %v607_v43 }
 0x3c4   :  { %v521_v48 = vpop.xlane.xlu0 %520 }
 0x3c5   :  { %v525_v50 = vsub.f32 %v517_v52, %v521_v48 }
 0x3c7   :  { %v527_v54 = vmul.f32 1.442695, %v525_v50 }
 0x3c9   :  { %1300 = vpow2.f32 %v527_v54 }
 0x3ca   :  { %523 = vmax.xlane.f32.xlu2 %v522_v55 }
 0x3cf   :  { %v1301_v56 = vpop.eup %1300 }
 0x3d0   :  { %v531_v57 = vsel %vm1782_vm6, %v1301_v56, 0.0  ;;  %v671_v56 = vld [vmem:[%s2015_s14 + $0x30] sm:$0xff] }
 0x3d1   :  { %v533_v58 = vsel %vm460_vm13, %v531_v57, 0.0 }
 0x3d2   :  { %534 = vadd.xlane.f32.xlu2 %v533_v58  ;;  %v674_v58 = vld [vmem:[%s2015_s14 + $0x48] sm:$0xff] }
 0x3d7   :  { %v634_v59 = vpop.permute.xlu0 %633 }
 0x3d8   :  { %646 = vmatpush.bf16.msra.mxu1 %v634_v59  ;;  %v672_v59 = vld [vmem:[%s2015_s14 + $0x38] sm:$0xff] }
 0x3df   :  { %v551_v60 = vpop.permute.xlu0 %550 }
 0x3e0   :  { %563 = vmatpush.bf16.msra.mxu3 %v551_v60  ;;  %v675_v60 = vld [vmem:[%s2015_s14 + $0x50] sm:$0xff] }
 0x42d   :  { %v606_v61 = vpop.xlane.xlu1 %605 }
 0x42e   :  { %v610_v63 = vsub.f32 %v602_v35, %v606_v61  ;;  %v673_v61 = vld [vmem:[%s2015_s14 + $0x40] sm:$0xff] }
 0x430   :  { %v612_v0 = vmul.f32 1.442695, %v610_v63  ;;  %v676_v63 = vld [vmem:[%s2015_s14 + $0x58] sm:$0xff] }
 0x432   :  { %1302 = vpow2.f32 %v612_v0  ;;  %v681_v0 = vpack.c.bf16 %v675_v60, %v672_v59 }
 0x435   :  { %v609_v1 = vpop.xlane.xlu2 %608 }
 0x436   :  { %v611_v2 = vsub.f32 %v603_v42, %v609_v1  ;;  %v682_v1 = vpack.c.bf16 %v676_v63, %v673_v61 }
 0x438   :  { %v1303_v62 = vpop.eup %1302  ;;  %v614_v3 = vmul.f32 1.442695, %v611_v2  ;;  %720 = vmatpush.bf16.msrb.mxu0 %v682_v1 }
 0x439   :  { %v616_v8 = vsel %vm1782_vm6, %v1303_v62, 0.0 }
 0x43a   :  { %1304 = vpow2.f32 %v614_v3  ;;  %v618_v20 = vsel %vm460_vm13, %v616_v8, 0.0 }
 0x43b   :  { %619 = vadd.xlane.f32.xlu1 %v618_v20  ;;  %v668_v20 = vld [vmem:[%s2015_s14 + $0x18] sm:$0xff] }
 0x43d   :  { %v524_v9 = vpop.xlane.xlu2 %523 }
 0x43e   :  { %v526_v12 = vsub.f32 %v518_v53, %v524_v9  ;;  %v666_v9 = vld [vmem:[%s2015_s14 + $0x8] sm:$0xff] }
 0x440   :  { %v1305_v18 = vpop.eup %1304  ;;  %v529_v19 = vmul.f32 1.442695, %v526_v12 }
 0x441   :  { %v617_v21 = vsel %vm1795_vm8, %v1305_v18, 0.0  ;;  %v669_v18 = vld [vmem:[%s2015_s14 + $0x20] sm:$0xff] }
 0x442   :  { %1306 = vpow2.f32 %v529_v19  ;;  %v621_v22 = vsel %vm460_vm13, %v617_v21, 0.0  ;;  %v667_v19 = vld [vmem:[%s2015_s14 + $0x10] sm:$0xff] }
 0x443   :  { %622 = vadd.xlane.f32.xlu2 %v621_v22  ;;  %v678_v22 = vpack.c.bf16 %v669_v18, %v666_v9 }
 0x445   :  { %v535_v34 = vpop.xlane.xlu2 %534 }
 0x446   :  { %v539_v35 = vmax.f32 %v535_v34, 1e-12  ;;  %v932_v34 = vld [vmem:[%s2018_s17] sm:$0xff] }
 0x448   :  { %v1307_v24 = vpop.eup %1306 }
 0x449   :  { %v532_v27 = vsel %vm1795_vm8, %v1307_v24, 0.0 }
 0x44a   :  { %v536_v31 = vsel %vm460_vm13, %v532_v27, 0.0 }
 0x44b   :  { %537 = vadd.xlane.f32.xlu2 %v536_v31  ;;  %v935_v31 = vld [vmem:[%s2018_s17 + $0x18] sm:$0xff] }
 0x454   :  { %631 = vrot.lane.b32.xlu1 %v1764_v13, %s1372_s12 }
 0x463   :  { %548 = vrot.lane.b32.xlu2 %v1764_v13, %s1371_s6 }
 0x4ae   :  { %v620_v52 = vpop.xlane.xlu1 %619 }
 0x4af   :  { %v624_v6 = vmax.f32 %v620_v52, 1e-12  ;;  %v841_v52 = vmul.f32 %v1534_v45, %v1679_v29 }
 0x4b6   :  { %v623_v44 = vpop.xlane.xlu2 %622 }
 0x4b7   :  { %v625_v10 = vmax.f32 %v623_v44, 1e-12 }
 0x4b9   :  { %1308 = vrcp.f32 %v625_v10  ;;  %v933_v10 = vld [vmem:[%s2018_s17 + $0x8] sm:$0xff] }
 0x4ba   :  { %1310 = vrcp.f32 %v624_v6  ;;  %v840_v6 = vmul.f32 %v1534_v45, %v1586_v11 }
 0x4bb   :  { %1312 = vrcp.f32 %v539_v35  ;;  %v936_v35 = vpack.c.bf16 %v933_v10, %v932_v34 }
 0x4be   :  { %v538_v36 = vpop.xlane.xlu2 %537 }
 0x4bf   :  { %v540_v38 = vmax.f32 %v538_v36, 1e-12  ;;  %v1309_v39 = vpop.eup %1308  ;;  %v849_v36 = vadd.f32 %v1545_v49, %v841_v52 }
 0x4c0   :  { %v1311_v47 = vpop.eup %1310  ;;  %v629_v40 = vmul.f32 %v1309_v39, %v617_v21  ;;  %v670_v21 = vld [vmem:[%s2015_s14 + $0x28] sm:$0xff] }
 0x4c1   :  { %1314 = vrcp.f32 %v540_v38  ;;  %v1313_v42 = vpop.eup %1312  ;;  %v628_v43 = vmul.f32 %v1311_v47, %v616_v8  ;;  %v665_v8 = vld [vmem:[%s2015_s14] sm:$0xff]  ;;  %v679_v24 = vpack.c.bf16 %v670_v21, %v667_v19  ;;  %v848_v38 = vadd.f32 %v1545_v49, %v840_v6 }
 0x4c2   :  { %v543_v50 = vmul.f32 %v1313_v42, %v531_v57  ;;  %v680_v57 = vpack.c.bf16 %v674_v58, %v671_v56  ;;  %v677_v12 = vpack.c.bf16 %v668_v20, %v665_v8  ;;  %v1236_v39 = vmul.f32 -1.442695, %v849_v36 }
 0x4c3   :  { %v630_v53 = vpack.c.bf16 %v629_v40, %v628_v43  ;;  %721 = vmatpush.bf16.msrb.mxu0 %v679_v24  ;;  %v1235_v47 = vmul.f32 -1.442695, %v848_v38 }
 0x4c4   :  { %692 = vmatpush.bf16.msra.mxu2 %v680_v57  ;;  %1316 = vpow2.f32 %v1236_v39 }
 0x4c5   :  { %1318 = vpow2.f32 %v1235_v47 }
 0x4c6   :  { %v632_v46 = vpop.permute.xlu1 %631  ;;  %v549_v48 = vpop.permute.xlu2 %548 }
 0x4c7   :  { %v1315_v13 = vpop.eup %1314  ;;  %564 = vmatpush.bf16.msra.mxu3 %v549_v48  ;;  %647 = vmatpush.bf16.msra.mxu1 %v632_v46 }
 0x4c8   :  { %v544_v54 = vmul.f32 %v1315_v13, %v532_v27  ;;  %693 = vmatpush.bf16.msra.mxu2 %v677_v12  ;;  %v934_v27 = vld [vmem:[%s2018_s17 + $0x10] sm:$0xff] }
 0x4c9   :  { %v937_v44 = vpack.c.bf16 %v935_v31, %v934_v27 }
 0x4ca   :  { %v545_v55 = vpack.c.bf16 %v544_v54, %v543_v50  ;;  %1225 = vmatmul.msk.bf16.vlgmr.msra.gmra.mxu1 %vm460_vm13, %v630_v53  ;;  %v1317_v40 = vpop.eup %1316 }
 0x4cb   :  { %706 = vmatpush.bf16.msrb.mxu3 %v681_v0  ;;  %v1319_v42 = vpop.eup %1318  ;;  %v865_v43 = vadd.f32 1.0, %v1317_v40 }
 0x4cc   :  { %1223 = vmatmul.msk.bf16.vlgmr.msra.gmra.mxu3 %vm460_vm13, %v545_v55  ;;  %v864_v46 = vadd.f32 1.0, %v1319_v42 }
 0x4cd   :  { %1320 = vrcp.f32 %v865_v43  ;;  %v922_v1 = vand.u32 2147483648, %v865_v43  ;;  %vm916_vm15 = vweird.f32 %v865_v43 }
 0x4ce   :  { %1322 = vrcp.f32 %v864_v46  ;;  %vm901_vm9 = vweird.f32 %v864_v46  ;;  %v907_v0 = vand.u32 2147483648, %v864_v46 }
 0x4cf   :  { %707 = vmatpush.bf16.msrb.mxu3 %v678_v22  ;;  %v923_v9 = vor.u32 1.1754944e-38, %v922_v1 }
 0x4d0   :  { %v908_v20 = vor.u32 1.1754944e-38, %v907_v0 }
 0x4d3   :  { %954 = vmatpush.bf16.msra.mxu3 %v937_v44  ;;  %v1321_v54 = vpop.eup %1320 }
 0x4d4   :  { %v1323_v55 = vpop.eup %1322  ;;  %v912_v56 = vmul.f32 %v1321_v54, %v865_v43  ;;  %vm917_vm12 = vweird.f32 %v1321_v54 }
 0x4d5   :  { %v897_v58 = vmul.f32 %v1323_v55, %v864_v46  ;;  %vm902_vm11 = vweird.f32 %v1323_v55  ;;  %vm918_vm0 = vmor %vm916_vm15, %vm917_vm12 }
 0x4d6   :  { %v913_v59 = vsub.f32 1.0, %v912_v56  ;;  %vm903_vm14 = vmor %vm901_vm9, %vm902_vm11 }
 0x4d7   :  { %955 = vmatpush.bf16.msra.mxu3 %v936_v35  ;;  %v898_v57 = vsub.f32 1.0, %v897_v58 }
 0x4d8   :  { %v914_v60 = vmul.f32 %v1321_v54, %v913_v59  ;;  %v1274_v59 = vld [vmem:[%s2019_s18] ss:$0 sm:$0xff] }
 0x4d9   :  { %v899_v61 = vmul.f32 %v1323_v55, %v898_v57 }
 0x4da   :  { %v915_v63 = vadd.f32 %v1321_v54, %v914_v60 }
 0x4dc   :  { %v919_v8 = vsel %vm918_vm0, %v1321_v54, %v915_v63 }
 0x547   :  { %v649_v2 = vpop.f32.mrf.mxu1 }
 0x54f   :  { %v651_v62 = vpop.f32.mrf.mxu1  ;;  %v566_v29 = vpop.f32.mrf.mxu3 }
 0x550   :  { %v1257_v3 = vpack.i.bf16 %v651_v62, %v649_v2  ;;  %v900_v2 = vadd.f32 %v1323_v55, %v899_v61  ;;  %v905_v62 = vand.u32 2147483647, %v864_v46 }
 0x552   :  { %1258 = vrot.lane.b32.xlu1 %v1257_v3, %s1373_s2  ;;  %v920_v3 = vand.u32 2147483647, %v865_v43  ;;  %v904_v12 = vsel %vm903_vm14, %v1323_v55, %v900_v2  ;;  %vm906_vm1 = vcmp.eq.f32.partialorder %v905_v62, 8.507059e+37 }
 0x553   :  { %v909_v19 = vsel %vm906_vm1, %v908_v20, %v904_v12 }
 0x554   :  { %vm921_vm2 = vcmp.eq.f32.partialorder %v920_v3, 8.507059e+37  ;;  %v928_v16 = vmul.f32 %v909_v19, %v848_v38 }
 0x555   :  { %v924_v18 = vsel %vm921_vm2, %v923_v9, %v919_v8 }
 0x556   :  { %v929_v21 = vmul.f32 %v924_v18, %v849_v36 }
 0x557   :  { %v568_v11 = vpop.f32.mrf.mxu3 }
 0x558   :  { %v931_v30 = vpack.c.bf16 %v929_v21, %v928_v16 }
 0x5c4   :  { %v1259_v48 = vpop.permute.xlu1 %1258 }
 0x5c5   :  { %v1261_v13 = vunpack.i.h.bf16 %v1259_v48  ;;  %v1260_v45 = vunpack.i.l.bf16 %v1259_v48 }
 0x5c7   :  { %v662_v50 = vsel %vm235_vm10, %v566_v29, %v1260_v45  ;;  %v663_v49 = vsel %vm235_vm10, %v568_v11, %v1261_v13 }
 0x5c8   :  { %v664_v53 = vpack.c.bf16 %v663_v49, %v662_v50 }
 0x5ca   :  { %1226 = vmatmul.msk.bf16.vlgmr.msra.gmra.mxu2 %vm460_vm13, %v664_v53  ;;  %1227 = vmatmul.msk.bf16.vlgmr.msrb.gmra.mxu3 %vm460_vm13, %v664_v53 }
 0x5cb   :  { %1228 = vmatmul.msk.bf16.vlgmr.msrb.gmra.mxu0 %vm460_vm13, %v664_v53 }
 0x5da   :  { %1237 = vmatmul.msk.bf16.vlgmr.msra.gmra.mxu3 %vm460_vm13, %v930_v5 }
 0x5ea   :  { %1238 = vmatmul.msk.bf16.gmra.mxu3 %vm460_vm13, %v931_v30 }
 0x648   :  { %v723_v5 = vpop.f32.mrf.mxu0 }
 0x64d   :  { %v709_v22 = vpop.f32.mrf.mxu3  ;;  %v695_v27 = vpop.f32.mrf.mxu2 }
 0x650   :  { %v725_v24 = vpop.f32.mrf.mxu0 }
 0x651   :  { %v730_v31 = vpack.c.bf16 %v725_v24, %v723_v5 }
 0x653   :  { %738 = vrot.lane.b32.xlu1 %v730_v31, %s1368_s7 }
 0x655   :  { %v711_v34 = vpop.f32.mrf.mxu3  ;;  %v697_v44 = vpop.f32.mrf.mxu2 }
 0x656   :  { %v729_v52 = vpack.c.bf16 %v711_v34, %v709_v22  ;;  %v1890_v10 = vpack.c.bf16 %v697_v44, %v695_v27 }
 0x658   :  { %736 = vrot.lane.b32.xlu0 %v729_v52, %s1368_s7 }
 0x660   :  { %734 = vrot.lane.b32.xlu0 %v1890_v10, %s1368_s7 }
 0x6c5   :  { %v739_v6 = vpop.permute.xlu1 %738 }
 0x6ca   :  { %v737_v35 = vpop.permute.xlu0 %736 }
 0x6cb   :  { %v741_v36 = vsel %vm230_vm7, %v737_v35, %v739_v6 }
 0x6cc   :  { %770 = vmatpush.bf16.msrb.mxu2 %v741_v36 }
 0x6cf   :  { %1231 = vmatmul.msk.bf16.vlgmr.msrb.gmra.mxu2 %vm235_vm10, %v1621_v37 }
 0x6d2   :  { %v735_v38 = vpop.permute.xlu0 %734 }
 0x6d3   :  { %v740_v39 = vsel %vm230_vm7, %v735_v38, %v737_v35 }
 0x6d4   :  { %751 = vmatpush.bf16.msrb.mxu1 %v740_v39 }
 0x6d7   :  { %1229 = vmatmul.msk.bf16.vlgmr.msrb.gmra.mxu1 %vm235_vm10, %v1621_v37 }
 0x6df   :  { %1232 = vmatmul.msk.bf16.gmra.mxu2 %vm235_vm10, %v1691_v32 }
 0x6e7   :  { %1230 = vmatmul.msk.bf16.gmra.mxu1 %vm235_vm10, %v1691_v32 }
 0x752   :  { %v772_v47 = vpop.f32.mrf.mxu2 }
 0x754   :  { %v753_v29 = vpop.f32.mrf.mxu1 }
 0x75a   :  { %v774_v40 = vpop.f32.mrf.mxu2 }
 0x75c   :  { %v755_v42 = vpop.f32.mrf.mxu1 }
 0x75d   :  { %v784_v45 = vmul.f32 %v755_v42, %v1718_v14  ;;  %v785_v14 = vmul.f32 %v774_v40, %v1753_v28 }
 0x762   :  { %v777_v43 = vpop.f32.mrf.mxu2 }
 0x763   :  { %v787_v46 = vmul.f32 %v777_v43, %v1709_v7  ;;  %v782_v7 = vmul.f32 %v753_v29, %v1744_v25 }
 0x764   :  { %v758_v48 = vpop.f32.mrf.mxu1 }
 0x765   :  { %v786_v13 = vmul.f32 %v758_v48, %v1704_v4  ;;  %822 = vrot.lane.b32.xlu2 %v787_v46, %s1370_s9  ;;  %v783_v4 = vmul.f32 %v772_v47, %v1739_v23 }
 0x767   :  { %798 = vrot.lane.b32.xlu1 %v786_v13, %s1370_s9 }
 0x76a   :  { %v779_v37 = vpop.f32.mrf.mxu2 }
 0x76b   :  { %v789_v32 = vmul.f32 %v779_v37, %v1728_v17 }
 0x76c   :  { %v760_v11 = vpop.f32.mrf.mxu1 }
 0x76d   :  { %v788_v50 = vmul.f32 %v760_v11, %v1723_v15  ;;  %796 = vrot.lane.b32.xlu2 %v784_v45, %s1370_s9  ;;  %v957_v15 = vpop.f32.mrf.mxu3 }
 0x76e   :  { %v958_v5 = vadd.f32 %v1274_v59, %v957_v15 }
 0x76f   :  { %824 = vrot.lane.b32.xlu1 %v789_v32, %s1370_s9  ;;  %800 = vrot.lane.b32.xlu0 %v788_v50, %s1370_s9 }
 0x775   :  { %v959_v17 = vpop.f32.mrf.mxu3 }
 0x776   :  { %v960_v22 = vadd.f32 %v1274_v59, %v959_v17 }
 0x777   :  { %818 = vrot.lane.b32.xlu1 %v783_v4, %s1370_s9  ;;  %794 = vrot.lane.b32.xlu0 %v782_v7, %s1370_s9 }
 0x77d   :  { %v962_v49 = vpop.f32.mrf.mxu3 }
 0x77e   :  { %v963_v61 = vadd.f32 %v1274_v59, %v962_v49 }
 0x77f   :  { %820 = vrot.lane.b32.xlu0 %v785_v14, %s1370_s9 }
 0x785   :  { %v964_v58 = vpop.f32.mrf.mxu3 }
 0x786   :  { %v965_v63 = vadd.f32 %v1274_v59, %v964_v58 }
 0x787   :  { %1052 = vrot.lane.b32.xlu0 %v1890_v10, %s1371_s6 }
 0x7bf   :  { %v823_v55 = vpop.permute.xlu2 %822 }
 0x7c7   :  { %v797_v62 = vpop.permute.xlu2 %796 }
 0x7c8   :  { %v807_v9 = vadd.f32 %v797_v62, %v784_v45 }
 0x7ca   :  { %v811_v16 = vadd.f32 %v807_v9, %v785_v14 }
 0x7d9   :  { %v799_v53 = vpop.permute.xlu1 %798 }
 0x7da   :  { %v808_v54 = vadd.f32 %v799_v53, %v786_v13 }
 0x7dc   :  { %v812_v23 = vadd.f32 %v808_v54, %v787_v46 }
 0x7de   :  { %v832_v28 = vadd.f32 %v823_v55, %v812_v23 }
 0x7e0   :  { %v969_v1 = vmul.f32 %v963_v61, %v832_v28 }
 0x7e1   :  { %v801_v56 = vpop.permute.xlu0 %800  ;;  %v825_v60 = vpop.permute.xlu1 %824 }
 0x7e2   :  { %v809_v25 = vadd.f32 %v801_v56, %v788_v50 }
 0x7e4   :  { %v813_v57 = vadd.f32 %v809_v25, %v789_v32 }
 0x7e6   :  { %v833_v0 = vadd.f32 %v825_v60, %v813_v57 }
 0x7e8   :  { %v970_v2 = vmul.f32 %v965_v63, %v833_v0 }
 0x7e9   :  { %v795_v3 = vpop.permute.xlu0 %794  ;;  %v819_v19 = vpop.permute.xlu1 %818 }
 0x7ea   :  { %v806_v8 = vadd.f32 %v795_v3, %v782_v7  ;;  %v1925_v20 = vpack.c.bf16 %v970_v2, %v969_v1 }
 0x7ec   :  { %v810_v12 = vadd.f32 %v806_v8, %v783_v4  ;;  %1056 = vrot.lane.b32.xlu2 %v1925_v20, %s1368_s7  ;;  %v980_v18 = vsel %vm235_vm10, %v1925_v20, 0 }
 0x7ed   :  { %988 = vmatpush.bf16.xpose.msra.mxu0 %v980_v18 }
 0x7ee   :  { %v830_v21 = vadd.f32 %v819_v19, %v810_v12 }
 0x7f0   :  { %v967_v27 = vmul.f32 %v958_v5, %v830_v21 }
 0x7f1   :  { %v821_v30 = vpop.permute.xlu0 %820 }
 0x7f2   :  { %v831_v24 = vadd.f32 %v821_v30, %v811_v16 }
 0x7f4   :  { %v968_v31 = vmul.f32 %v960_v22, %v831_v24 }
 0x7f6   :  { %v1931_v34 = vpack.c.bf16 %v968_v31, %v967_v27 }
 0x7f8   :  { %1054 = vrot.lane.b32.xlu1 %v1931_v34, %s1368_s7  ;;  %v977_v52 = vsel %vm235_vm10, %v1931_v34, 0 }
 0x7f9   :  { %989 = vmatpush.bf16.xpose.msra.mxu0 %v977_v52  ;;  %v1053_v38 = vpop.permute.xlu0 %1052 }
 0x800   :  { %1239 = vmatmul.msk.bf16.vlgmr.msra.gmra.mxu0 %vm235_vm10, %v1890_v10 }
 0x846   :  { %v1057_v44 = vpop.permute.xlu2 %1056 }
 0x847   :  { %v1065_v6 = vsel %vm235_vm10, %v1057_v44, 0 }
 0x848   :  { %1073 = vmatpush.bf16.xpose.msra.mxu1 %v1065_v6 }
 0x86a   :  { %v1055_v35 = vpop.permute.xlu1 %1054 }
 0x86b   :  { %v1062_v36 = vsel %vm235_vm10, %v1055_v35, 0 }
 0x86c   :  { %1074 = vmatpush.bf16.xpose.msra.mxu1 %v1062_v36 }
 0x873   :  { %1241 = vmatmul.msk.bf16.vlgmr.msra.gmra.mxu1 %vm235_vm10, %v1053_v38 }
 0x87d   :  { %v991_v39 = vpop.f32.mrf.mxu0 }
 0x87e   :  { %v996_v47 = vmul.f32 0.25, %v991_v39 }
 0x880   :  { %v998_v29 = vsel %vm1782_vm6, %v996_v47, -1e+30 }
 0x881   :  { %v1000_v40 = vsel %vm460_vm13, %v998_v29, -inf }
 0x882   :  { %1001 = vmax.xlane.f32.xlu0 %v1000_v40  ;;  %v1165_v40 = vld [vmem:[%s2009_s8 + $0x10] sm:$0xff] }
 0x885   :  { %v993_v43 = vpop.f32.mrf.mxu0 }
 0x886   :  { %v997_v13 = vmul.f32 0.25, %v993_v43 }
 0x888   :  { %v999_v11 = vsel %vm1795_vm8, %v997_v13, -1e+30 }
 0x889   :  { %v1003_v50 = vsel %vm460_vm13, %v999_v11, -inf }
 0x8f0   :  { %v1076_v10 = vpop.f32.mrf.mxu1 }
 0x8f1   :  { %v1081_v42 = vmul.f32 0.25, %v1076_v10  ;;  %v1166_v10 = vld [vmem:[%s2009_s8 + $0x18] sm:$0xff] }
 0x8f3   :  { %v1083_v46 = vsel %vm1782_vm6, %v1081_v42, -1e+30  ;;  %v1168_v42 = vpack.c.bf16 %v1166_v10, %v1165_v40 }
 0x8f4   :  { %v1085_v48 = vsel %vm460_vm13, %v1083_v46, -inf }
 0x8f5   :  { %1086 = vmax.xlane.f32.xlu2 %v1085_v48  ;;  %v1002_v17 = vpop.xlane.xlu0 %1001 }
 0x8f6   :  { %v1006_v55 = vsub.f32 %v998_v29, %v1002_v17 }
 0x8f8   :  { %v1078_v37 = vpop.f32.mrf.mxu1  ;;  %v1008_v59 = vmul.f32 1.442695, %v1006_v55 }
 0x8f9   :  { %v1082_v45 = vmul.f32 0.25, %v1078_v37 }
 0x8fb   :  { %v1084_v32 = vsel %vm1795_vm8, %v1082_v45, -1e+30 }
 0x8fc   :  { %v1088_v4 = vsel %vm460_vm13, %v1084_v32, -inf }
 0x8fd   :  { %1004 = vmax.xlane.f32.xlu2 %v1003_v50  ;;  %1089 = vmax.xlane.f32.xlu1 %v1088_v4 }
 0x915   :  { %1114 = vrot.lane.b32.xlu2 %v1925_v20, %s1372_s12 }
 0x91d   :  { %1029 = vrot.lane.b32.xlu2 %v1931_v34, %s1371_s6 }
 0x968   :  { %v1087_v7 = vpop.xlane.xlu2 %1086 }
 0x969   :  { %v1091_v14 = vsub.f32 %v1083_v46, %v1087_v7  ;;  %v1275_v46 = vld [vmem:[%s2006_s5] ss:$0 sm:$0xff] }
 0x96a   :  { %vm119_vm7 = vcmp.eq.s32.totalorder %v1779_v51, %v1275_v46  ;;  %v1164_v51 = vld [vmem:[%s2009_s8 + $0x8] sm:$0xff] }
 0x96b   :  { %v1093_v15 = vmul.f32 1.442695, %v1091_v14  ;;  %v1163_v14 = vld [vmem:[%s2009_s8] sm:$0xff] }
 0x96d   :  { %1324 = vpow2.f32 %v1093_v15  ;;  %v1167_v15 = vpack.c.bf16 %v1164_v51, %v1163_v14 }
 0x970   :  { %v1005_v49 = vpop.xlane.xlu2 %1004  ;;  %v1090_v53 = vpop.xlane.xlu1 %1089 }
 0x971   :  { %v1092_v54 = vsub.f32 %v1084_v32, %v1090_v53  ;;  %v1007_v57 = vsub.f32 %v999_v11, %v1005_v49  ;;  %v1207_v11 = vsel %vm119_vm7, 1.0, %v1369_v26 }
 0x972   :  { %v122_v7 = vpack.c.bf16 %v1207_v11, %v1207_v11 }
 0x973   :  { %v1325_v23 = vpop.eup %1324  ;;  %v1095_v56 = vmul.f32 1.442695, %v1092_v54  ;;  %v1010_v63 = vmul.f32 1.442695, %v1007_v57 }
 0x974   :  { %v1097_v25 = vsel %vm1782_vm6, %v1325_v23, 0.0 }
 0x975   :  { %v1099_v58 = vsel %vm460_vm13, %v1097_v25, 0.0  ;;  %1326 = vpow2.f32 %v1095_v56 }
 0x976   :  { %1100 = vadd.xlane.f32.xlu1 %v1099_v58  ;;  %1328 = vpow2.f32 %v1008_v59 }
 0x977   :  { %1330 = vpow2.f32 %v1010_v63 }
 0x978   :  { %v1115_v28 = vpop.permute.xlu2 %1114 }
 0x979   :  { %1127 = vmatpush.bf16.msra.mxu2 %v1115_v28 }
 0x97b   :  { %v1327_v60 = vpop.eup %1326 }
 0x97c   :  { %v1098_v61 = vsel %vm1795_vm8, %v1327_v60, 0.0  ;;  %v1329_v1 = vpop.eup %1328 }
 0x97d   :  { %v1102_v0 = vsel %vm460_vm13, %v1098_v61, 0.0  ;;  %v1012_v2 = vsel %vm1782_vm6, %v1329_v1, 0.0  ;;  %v1331_v3 = vpop.eup %1330 }
 0x97e   :  { %1103 = vadd.xlane.f32.xlu0 %v1102_v0  ;;  %v1014_v62 = vsel %vm460_vm13, %v1012_v2, 0.0  ;;  %v1013_v8 = vsel %vm1795_vm8, %v1331_v3, 0.0 }
 0x97f   :  { %v1017_v9 = vsel %vm460_vm13, %v1013_v8, 0.0 }
 0x980   :  { %v1030_v35 = vpop.permute.xlu2 %1029 }
 0x986   :  { %1015 = vadd.xlane.f32.xlu0 %v1014_v62 }
 0x98e   :  { %1018 = vadd.xlane.f32.xlu0 %v1017_v9 }
 0x98f   :  { %1112 = vrot.lane.b32.xlu1 %v1931_v34, %s1372_s12 }
 0x9a2   :  { %1031 = vrot.lane.b32.xlu0 %v1925_v20, %s1371_s6 }
 0x9e9   :  { %v1101_v12 = vpop.xlane.xlu1 %1100 }
 0x9ea   :  { %v1105_v19 = vmax.f32 %v1101_v12, 1e-12 }
 0x9f1   :  { %v1104_v18 = vpop.xlane.xlu0 %1103 }
 0x9f2   :  { %v1106_v33 = vmax.f32 %v1104_v18, 1e-12 }
 0x9f4   :  { %1332 = vrcp.f32 %v1106_v33 }
 0x9f5   :  { %1334 = vrcp.f32 %v1105_v19 }
 0x9f9   :  { %v1016_v16 = vpop.xlane.xlu0 %1015 }
 0x9fa   :  { %v1333_v21 = vpop.eup %1332  ;;  %v1020_v34 = vmax.f32 %v1016_v16, 1e-12 }
 0x9fb   :  { %v1335_v30 = vpop.eup %1334  ;;  %v1110_v41 = vmul.f32 %v1333_v21, %v1098_v61 }
 0x9fc   :  { %v1109_v5 = vmul.f32 %v1335_v30, %v1097_v25 }
 0x9fe   :  { %v1111_v24 = vpack.c.bf16 %v1110_v41, %v1109_v5 }
 0xa01   :  { %v1113_v22 = vpop.permute.xlu1 %1112  ;;  %v1019_v27 = vpop.xlane.xlu0 %1018 }
 0xa02   :  { %1128 = vmatpush.bf16.msra.mxu2 %v1113_v22  ;;  %v1021_v31 = vmax.f32 %v1019_v27, 1e-12 }
 0xa04   :  { %1336 = vrcp.f32 %v1021_v31 }
 0xa05   :  { %1242 = vmatmul.msk.bf16.vlgmr.msra.gmra.mxu2 %vm460_vm13, %v1111_v24  ;;  %1338 = vrcp.f32 %v1020_v34 }
 0xa0a   :  { %v1337_v20 = vpop.eup %1336 }
 0xa0b   :  { %v1339_v44 = vpop.eup %1338  ;;  %v1025_v6 = vmul.f32 %v1337_v20, %v1013_v8 }
 0xa0c   :  { %v1024_v36 = vmul.f32 %v1339_v44, %v1012_v2 }
 0xa0e   :  { %v1026_v38 = vpack.c.bf16 %v1025_v6, %v1024_v36 }
 0xa14   :  { %v1032_v52 = vpop.permute.xlu0 %1031 }
 0xa15   :  { %1044 = vmatpush.bf16.msrb.mxu0 %v1032_v52 }
 0xa19   :  { %1045 = vmatpush.bf16.msrb.mxu0 %v1030_v35 }
 0xa1c   :  { %1240 = vmatmul.msk.bf16.vlgmr.msrb.gmra.mxu0 %vm460_vm13, %v1026_v38 }
 0xa1d   :  { %1178 = vmatpush.bf16.msra.mxu0 %v1168_v42 }
 0xa21   :  { %1179 = vmatpush.bf16.msra.mxu0 %v1167_v15 }
 0xa88   :  { %v1130_v39 = vpop.f32.mrf.mxu2 }
 0xa90   :  { %v1132_v47 = vpop.f32.mrf.mxu2 }
 0xa91   :  { %v1262_v29 = vpack.i.bf16 %v1132_v47, %v1130_v39 }
 0xa93   :  { %1263 = vrot.lane.b32.xlu1 %v1262_v29, %s1373_s2 }
 0xa99   :  { %v1047_v43 = vpop.f32.mrf.mxu0 }
 0xaa1   :  { %v1049_v45 = vpop.f32.mrf.mxu0 }
 0xb05   :  { %v1264_v48 = vpop.permute.xlu1 %1263 }
 0xb06   :  { %v1266_v13 = vunpack.i.h.bf16 %v1264_v48  ;;  %v1265_v37 = vunpack.i.l.bf16 %v1264_v48 }
 0xb08   :  { %v1143_v32 = vsel %vm235_vm10, %v1047_v43, %v1265_v37  ;;  %v1144_v50 = vsel %vm235_vm10, %v1049_v45, %v1266_v13 }
 0xb09   :  { %v1145_v4 = vpack.c.bf16 %v1144_v50, %v1143_v32 }
 0xb0b   :  { %1156 = vmatpush.bf16.msrb.mxu3 %v1145_v4 }
 0xb0e   :  { %1243 = vmatmul.msk.bf16.vlgmr.msrb.gmra.mxu3 %vm235_vm10, %v122_v7  ;;  %vm1185_vm10 = vcmask 58368  }
 0xb91   :  { %v1158_v26 = vpop.f32.mrf.mxu3 }
 0xb92   :  { %v1162_v17 = vpack.c.bf16 %v1158_v26, %v1158_v26 }
 0xb94   :  { %1244 = vmatmul.msk.bf16.vlgmr.msra.gmra.mxu0 %vm460_vm13, %v1162_v17 }
 0xb99   :  { %v1160_v49 = vpop.f32.mrf.mxu3 }
 0xc11   :  { %v1181_v53 = vpop.f32.mrf.mxu0 }
 0xc12   :  { %1186 = vst.msk [vmem:[#allocation2] sm:$0x3] %vm1185_vm10, %v1181_v53 }
 0xc13   :  { %1197 = dma.vmem_to_hbm [thread:$0]  %s1193_s23, 32, %s1195_s25, [#allocation3]  }
 0xc19   :  { %v1183_v54 = vpop.f32.mrf.mxu0 }
 0xc1a   :  { %1364 = dma.done.wait [#allocation3], 32  }
 0xc1b   :  { %1365 = vsyncadd [#allocation3], 4294967264 }
 0xc1c   :  { %1202 = vsyncpa [#allocation3], 1 }

</bundles_post_ra>
